<compile_context>
chip_gen: v7x
topology: tpu7x:2x2x1
jax: 0.10.0
libtpu: 0.0.40
codegen_flags: <defaults>
</compile_context>

<pallas_src>
import numpy as np
import jax
import jax.numpy as jnp
from jax.experimental import pallas as pl
from jax.experimental.pallas import tpu as pltpu


HID = 128        # node_hid_feats (lane-dense; original default 300)
READOUT = 128    # readout_feats  (original default 1024)
PRED_HID = 128   # predict_hidden_feats (original default 512)
OUT_PAD = 128    # lane-padded prediction width; only columns 0,1 are real
N_PAD = 128      # per-graph node padding (MXU-native contraction width)
E_PAD = 128      # per-graph edge padding (MXU-native contraction width)
B_PAD = 8        # reaction-batch padding for the head (full sublane tile)
DEPTH = 3


# --------------------------- kernel 1: per-block GIN -------------------------

def gin_block_kernel(
        n_nodes_ref,                                    # SMEM (MB,) int32 (scalar prefetch)
        node_x_ref, edge_x_ref, src_ref, dst_ref,       # per-block streamed tiles
        w_pn_ref, b_pn_ref, w_pe_ref, b_pe_ref,
        gw1_ref, gb1_ref, gw2_ref, gb2_ref,
        w_sp_ref, b_sp_ref, alpha_ref,
        out_ref):
    """One (molecule, reaction) graph block: project -> depth x GINEConv ->
    AvgPool over the real nodes -> sparsify (Linear + PReLU)."""
    f32 = jnp.float32
    blk = pl.program_id(0)

    x = node_x_ref[...]                                  # (N_PAD, Fn) f32
    e_x = edge_x_ref[...]                                # (E_PAD, Fe) f32
    # int8 0/1 incidence (exact), upcast to bf16 for native MXU matmuls.
    src = src_ref[...].astype(jnp.bfloat16)              # (E_PAD, N_PAD)
    dst = dst_ref[...].astype(jnp.bfloat16)              # (E_PAD, N_PAD)

    # project_node_feats: Linear + ReLU ; project_edge_feats: Linear
    h = jnp.maximum(
        jnp.dot(x, w_pn_ref[...], preferred_element_type=f32) + b_pn_ref[...], 0.0)
    e = jnp.dot(e_x, w_pe_ref[...], preferred_element_type=f32) + b_pe_ref[...]

    depth = gw1_ref.shape[0]
    for i in range(depth):                               # unrolled (depth = 3)
        # GINEConv (eps = 0): agg_v = sum_{edges u->v} relu(h_u + e_uv)
        # TODO(synk): learn_eps / non-zero eps variants are not implemented.
        src_h = jnp.dot(src, h.astype(jnp.bfloat16),
                        preferred_element_type=f32)      # (E_PAD, HID) gather
        msg = jnp.maximum(src_h + e, 0.0)
        # scatter-add without materializing the transposed incidence:
        # contract the edge axis (dim 0) of dst against dim 0 of msg.
        agg = jax.lax.dot_general(
            dst, msg.astype(jnp.bfloat16),
            dimension_numbers=(((0,), (0,)), ((), ())),
            preferred_element_type=f32)                  # (N_PAD, HID)
        z = h + agg
        # apply_func: Linear -> ReLU -> Linear
        hid = jnp.maximum(
            jnp.dot(z, gw1_ref[i], preferred_element_type=f32) + gb1_ref[i], 0.0)
        h = jnp.dot(hid, gw2_ref[i], preferred_element_type=f32) + gb2_ref[i]
        if i < depth - 1:
            h = jnp.maximum(h, 0.0)
        # dropout: inference mode -> identity
        # TODO(synk): training-mode dropout (pltpu.prng_* + mask) not implemented.

    # AvgPooling over the real nodes of this block (padded rows masked out):
    # exact f32 masked sum on VPU/XLU + 1/n scale, no f32-operand matmul.
    n = n_nodes_ref[blk]
    row = jax.lax.broadcasted_iota(jnp.int32, h.shape, 0)
    pooled = jnp.sum(jnp.where(row < n, h, 0.0), axis=0, keepdims=True)
    pooled = pooled * (1.0 / n.astype(f32))              # (1, HID)

    # sparsify: Linear + PReLU (scalar slope broadcast as a lane-dense row).
    sp = jnp.dot(pooled, w_sp_ref[...], preferred_element_type=f32) + b_sp_ref[...]
    sp = jnp.where(sp > 0, sp, alpha_ref[...] * sp)      # (1, READOUT)
    out_ref[0] = sp


# ---------------------- kernel 2: molecule sum + head ------------------------

def predict_head_kernel(sp_ref, sel_r_ref, sel_p_ref,
                        w1r_ref, w1p_ref, b1_ref, w2_ref, b2_ref, w3_ref, b3_ref,
                        alpha_ref, out_ref):
    f32 = jnp.float32
    sp = sp_ref[...]                                     # (MB, READOUT)
    # torch.sum over reactant / product molecules.  Kept f32 for exactness;
    # these GEMMs are tiny so the f32 MXU emulation cost is negligible.
    r_feats = jnp.dot(sel_r_ref[...], sp, preferred_element_type=f32)   # (B_PAD, R)
    p_feats = jnp.dot(sel_p_ref[...], sp, preferred_element_type=f32)   # (B_PAD, R)
    # concat([r, p], 1) @ W1 == r @ W1[:R] + p @ W1[R:]  (no concat)
    h1 = (jnp.dot(r_feats, w1r_ref[...], preferred_element_type=f32)
          + jnp.dot(p_feats, w1p_ref[...], preferred_element_type=f32)
          + b1_ref[...])
    h1 = jnp.where(h1 > 0, h1, alpha_ref[0] * h1)        # PReLU
    h2 = jnp.dot(h1, w2_ref[...], preferred_element_type=f32) + b2_ref[...]
    h2 = jnp.where(h2 > 0, h2, alpha_ref[1] * h2)        # PReLU
    # Dropout in the head: inference -> identity.
    out_ref[...] = jnp.dot(h2, w3_ref[...], preferred_element_type=f32) + b3_ref[...]


# --------------------------------- wrapper -----------------------------------

def reaction_mpnn_forward(packed, gin_params, pred_params, batch_size):
    """packed = (node_x, edge_x, src_inc, dst_inc, n_nodes, sel_r, sel_p);
    one padded block per (molecule, reaction) graph."""
    node_x, edge_x, src_inc, dst_inc, n_nodes, sel_r, sel_p = packed
    MB = node_x.shape[0]
    fn = node_x.shape[-1]
    fe = edge_x.shape[-1]
    depth = gin_params["gw1"].shape[0]

    # ---- call #1: per-block GIN, parallel grid over blocks -----------------
    def blk(shape):
        # per-block tile; leading block dim squeezed away in the kernel
        return pl.BlockSpec((None,) + shape,
                            lambda b, nn, shape=shape: (b,) + (0,) * len(shape))

    def const(shape):
        # whole array, constant block index -> stays VMEM-resident across steps
        return pl.BlockSpec(shape, lambda b, nn, shape=shape: (0,) * len(shape))

    grid_spec = pltpu.PrefetchScalarGridSpec(
        num_scalar_prefetch=1,                 # n_nodes table -> SMEM
        grid=(MB,),
        in_specs=[
            blk((N_PAD, fn)), blk((E_PAD, fe)),
            blk((E_PAD, N_PAD)), blk((E_PAD, N_PAD)),
            const((fn, HID)), const((1, HID)),
            const((fe, HID)), const((1, HID)),
            const((depth, HID, HID)), const((depth, 1, HID)),
            const((depth, HID, HID)), const((depth, 1, HID)),
            const((HID, READOUT)), const((1, READOUT)), const((1, READOUT)),
        ],
        out_specs=pl.BlockSpec((1, 1, READOUT), lambda b, nn: (b, 0, 0)),
    )
    sp = pl.pallas_call(
        gin_block_kernel,
        out_shape=jax.ShapeDtypeStruct((MB, 1, READOUT), jnp.float32),
        grid_spec=grid_spec,
        compiler_params=pltpu.CompilerParams(
            dimension_semantics=("parallel",),        # v7x: 2 TCs split the blocks
            vmem_limit_bytes=32 * 1024 * 1024),
    )(n_nodes, node_x, edge_x, src_inc, dst_inc,
      gin_params["w_pn"], gin_params["b_pn"],
      gin_params["w_pe"], gin_params["b_pe"],
      gin_params["gw1"], gin_params["gb1"],
      gin_params["gw2"], gin_params["gb2"],
      gin_params["w_sp"], gin_params["b_sp"], gin_params["prelu_a"])
    sp = sp.reshape(MB, READOUT)

    # ---- call #2: sum over molecules + prediction head (tiny) --------------
    vmem = pl.BlockSpec(memory_space=pltpu.MemorySpace.VMEM)
    smem = pl.BlockSpec(memory_space=pltpu.MemorySpace.SMEM)
    head_alphas = jnp.concatenate([pred_params["a1"], pred_params["a2"]])   # (2,)
    out = pl.pallas_call(
        predict_head_kernel,
        out_shape=jax.ShapeDtypeStruct((B_PAD, OUT_PAD), jnp.float32),
        in_specs=[vmem] * 10 + [smem],
        out_specs=vmem,
        compiler_params=pltpu.CompilerParams(vmem_limit_bytes=8 * 1024 * 1024),
    )(sp, sel_r, sel_p,
      pred_params["w1r"], pred_params["w1p"], pred_params["b1"],
      pred_params["w2"], pred_params["b2"],
      pred_params["w3"], pred_params["b3"], head_alphas)
    # only the first batch_size rows and the first two lanes are real
    return out[:batch_size, 0], out[:batch_size, 1]


# ----------------------------- parameter init --------------------------------

def _linear(key, fin, fout):
    k1, k2 = jax.random.split(key)
    s = 1.0 / jnp.sqrt(fin)
    w = jax.random.normal(k1, (fin, fout), jnp.float32) * s
    b = jax.random.normal(k2, (1, fout), jnp.float32) * 0.01
    return w, b


def init_params(key, node_in, edge_in, hid, readout_feats, pred_hid, depth=3):
    keys = jax.random.split(key, 12)
    w_pn, b_pn = _linear(keys[0], node_in, hid)
    w_pe, b_pe = _linear(keys[1], edge_in, hid)
    gw1, gb1, gw2, gb2 = [], [], [], []
    for d in range(depth):
        w1, b1 = _linear(keys[2 + d], hid, hid)
        w2, b2 = _linear(keys[5 + d], hid, hid)
        gw1.append(w1); gb1.append(b1); gw2.append(w2); gb2.append(b2)
    w_sp, b_sp = _linear(keys[8], hid, readout_feats)
    gin_params = dict(
        w_pn=w_pn, b_pn=b_pn, w_pe=w_pe, b_pe=b_pe,
        gw1=jnp.stack(gw1), gb1=jnp.stack(gb1),
        gw2=jnp.stack(gw2), gb2=jnp.stack(gb2),
        w_sp=w_sp, b_sp=b_sp,
        # nn.PReLU() default slope, broadcast to a lane-dense row for the kernel
        prelu_a=jnp.full((1, readout_feats), 0.25, jnp.float32),
    )

    # prediction head; the 2R -> P linear is split into its r / p halves
    w1_full, b1 = _linear(keys[9], 2 * readout_feats, pred_hid)
    w1r = w1_full[:readout_feats]
    w1p = w1_full[readout_feats:]
    w2, b2 = _linear(keys[10], pred_hid, pred_hid)
    w3_true, b3_true = _linear(keys[11], pred_hid, 2)
    # zero-pad the 2-wide output head to a lane-dense 128-wide output block
    w3 = jnp.zeros((pred_hid, OUT_PAD), jnp.float32).at[:, :2].set(w3_true)
    b3 = jnp.zeros((1, OUT_PAD), jnp.float32).at[:, :2].set(b3_true)
    pred_params = dict(
        w1r=w1r, w1p=w1p, b1=b1,
        a1=jnp.full((1,), 0.25, jnp.float32),
        w2=w2, b2=b2,
        a2=jnp.full((1,), 0.25, jnp.float32),
        w3=w3, b3=b3,
    )
    return gin_params, pred_params


# ----------------------------- synthetic graph data --------------------------

def make_packed_reaction_batch(key, num_rmols, num_pmols, batch_size,
                               nodes_per_graph, node_in, edge_in):
    """One padded block per (molecule, reaction) graph: node/edge features,
    int8 src/dst incidence, node counts, and the per-reaction selection masks."""
    M = num_rmols + num_pmols
    MB = M * batch_size
    n_g = nodes_per_graph
    e_g = 2 * nodes_per_graph                  # directed ring, both ways
    assert n_g <= N_PAD and e_g <= E_PAD and batch_size <= B_PAD

    # Directed ring topology (same for every block in this synthetic demo).
    src_local, dst_local = [], []
    for i in range(n_g):
        u, v = i, (i + 1) % n_g
        src_local += [u, v]
        dst_local += [v, u]

    src_blk = np.zeros((E_PAD, N_PAD), np.int8)
    dst_blk = np.zeros((E_PAD, N_PAD), np.int8)
    for e, (u, v) in enumerate(zip(src_local, dst_local)):
        src_blk[e, u] = 1
        dst_blk[e, v] = 1
    src_inc = jnp.asarray(np.broadcast_to(src_blk, (MB, E_PAD, N_PAD)).copy())
    dst_inc = jnp.asarray(np.broadcast_to(dst_blk, (MB, E_PAD, N_PAD)).copy())

    n_nodes = jnp.full((MB,), n_g, jnp.int32)

    # Per-reaction selection masks summing molecule readouts (padded rows = 0).
    sel_r = np.zeros((B_PAD, MB), np.float32)
    sel_p = np.zeros((B_PAD, MB), np.float32)
    for m in range(M):
        for g in range(batch_size):
            (sel_r if m < num_rmols else sel_p)[g, m * batch_size + g] = 1.0
    sel_r, sel_p = jnp.asarray(sel_r), jnp.asarray(sel_p)

    k1, k2 = jax.random.split(key)
    node_x = jnp.zeros((MB, N_PAD, node_in), jnp.float32)
    node_x = node_x.at[:, :n_g, :].set(
        jax.random.normal(k1, (MB, n_g, node_in), jnp.float32))
    edge_x = jnp.zeros((MB, E_PAD, edge_in), jnp.float32)
    edge_x = edge_x.at[:, :e_g, :].set(
        jax.random.normal(k2, (MB, e_g, edge_in), jnp.float32))

    return (node_x, edge_x, src_inc, dst_inc, n_nodes, sel_r, sel_p)


# ------------------------------------ main -----------------------------------

if __name__ == "__main__":
    B = 2                      # reactions per batch
    nodes_per_graph = 4
    node_in, edge_in = 16, 8
    num_rmols, num_pmols = 2, 1

    key = jax.random.PRNGKey(0)
    k_par, k_data = jax.random.split(key)
    gin_params, pred_params = init_params(
        k_par, node_in, edge_in, HID, READOUT, PRED_HID, depth=DEPTH)
    packed = make_packed_reaction_batch(
        k_data, num_rmols, num_pmols, B, nodes_per_graph, node_in, edge_in)

    mean_out, logvar_out = reaction_mpnn_forward(packed, gin_params, pred_params, B)
    jax.block_until_ready((mean_out, logvar_out))

    assert mean_out.shape == (B,) and logvar_out.shape == (B,)
    print("KERNEL_OK")
</pallas_src>

<mosaic_0001>
module attributes {stable_mosaic.version = 11 : i64} {
  func.func @gin_block_kernel(%arg0: i32, %arg1: memref<6xi32, #tpu.memory_space<smem>>, %arg2: memref<1x128x16xf32, #tpu.memory_space<vmem>>, %arg3: memref<1x128x8xf32, #tpu.memory_space<vmem>>, %arg4: memref<1x128x128xi8, #tpu.memory_space<vmem>>, %arg5: memref<1x128x128xi8, #tpu.memory_space<vmem>>, %arg6: memref<16x128xf32, #tpu.memory_space<vmem>>, %arg7: memref<1x128xf32, #tpu.memory_space<vmem>>, %arg8: memref<8x128xf32, #tpu.memory_space<vmem>>, %arg9: memref<1x128xf32, #tpu.memory_space<vmem>>, %arg10: memref<3x128x128xf32, #tpu.memory_space<vmem>>, %arg11: memref<3x1x128xf32, #tpu.memory_space<vmem>>, %arg12: memref<3x128x128xf32, #tpu.memory_space<vmem>>, %arg13: memref<3x1x128xf32, #tpu.memory_space<vmem>>, %arg14: memref<128x128xf32, #tpu.memory_space<vmem>>, %arg15: memref<1x128xf32, #tpu.memory_space<vmem>>, %arg16: memref<1x128xf32, #tpu.memory_space<vmem>>, %arg17: memref<1x1x128xf32, #tpu.memory_space<vmem>>) attributes {dimension_semantics = [#tpu.dimension_semantics<parallel>], iteration_bounds = array<i64: 6>, scalar_prefetch = 1 : i64, scratch_operands = 0 : i64, tpu.core_type = #tpu.core_type<tc>, window_params = [{transform_indices = @transform_0, window_bounds = array<i64: 1, 128, 16>}, {transform_indices = @transform_1, window_bounds = array<i64: 1, 128, 8>}, {transform_indices = @transform_2, window_bounds = array<i64: 1, 128, 128>}, {transform_indices = @transform_3, window_bounds = array<i64: 1, 128, 128>}, {pipeline_mode = #tpu.pipeline_mode<synchronous>, transform_indices = @transform_4, window_bounds = array<i64: 16, 128>}, {pipeline_mode = #tpu.pipeline_mode<synchronous>, transform_indices = @transform_5, window_bounds = array<i64: 1, 128>}, {pipeline_mode = #tpu.pipeline_mode<synchronous>, transform_indices = @transform_6, window_bounds = array<i64: 8, 128>}, {pipeline_mode = #tpu.pipeline_mode<synchronous>, transform_indices = @transform_7, window_bounds = array<i64: 1, 128>}, {pipeline_mode = #tpu.pipeline_mode<synchronous>, transform_indices = @transform_8, window_bounds = array<i64: 3, 128, 128>}, {pipeline_mode = #tpu.pipeline_mode<synchronous>, transform_indices = @transform_9, window_bounds = array<i64: 3, 1, 128>}, {pipeline_mode = #tpu.pipeline_mode<synchronous>, transform_indices = @transform_10, window_bounds = array<i64: 3, 128, 128>}, {pipeline_mode = #tpu.pipeline_mode<synchronous>, transform_indices = @transform_11, window_bounds = array<i64: 3, 1, 128>}, {pipeline_mode = #tpu.pipeline_mode<synchronous>, transform_indices = @transform_12, window_bounds = array<i64: 128, 128>}, {pipeline_mode = #tpu.pipeline_mode<synchronous>, transform_indices = @transform_13, window_bounds = array<i64: 1, 128>}, {pipeline_mode = #tpu.pipeline_mode<synchronous>, transform_indices = @transform_14, window_bounds = array<i64: 1, 128>}, {transform_indices = @transform_15, window_bounds = array<i64: 1, 1, 128>}]} {
    %c0 = arith.constant 0 : index
    %c0_0 = arith.constant 0 : index
    %c0_1 = arith.constant 0 : index
    %0 = vector.load %arg2[%c0, %c0_0, %c0_1] : memref<1x128x16xf32, #tpu.memory_space<vmem>>, vector<1x128x16xf32>
    %1 = vector.shape_cast %0 : vector<1x128x16xf32> to vector<128x16xf32>
    %c0_2 = arith.constant 0 : index
    %c0_3 = arith.constant 0 : index
    %c0_4 = arith.constant 0 : index
    %2 = vector.load %arg3[%c0_2, %c0_3, %c0_4] : memref<1x128x8xf32, #tpu.memory_space<vmem>>, vector<1x128x8xf32>
    %3 = vector.shape_cast %2 : vector<1x128x8xf32> to vector<128x8xf32>
    %c0_5 = arith.constant 0 : index
    %c0_6 = arith.constant 0 : index
    %c0_7 = arith.constant 0 : index
    %4 = vector.load %arg4[%c0_5, %c0_6, %c0_7] : memref<1x128x128xi8, #tpu.memory_space<vmem>>, vector<1x128x128xi8>
    %5 = vector.shape_cast %4 : vector<1x128x128xi8> to vector<128x128xi8>
    %6 = arith.sitofp %5 : vector<128x128xi8> to vector<128x128xbf16>
    %c0_8 = arith.constant 0 : index
    %c0_9 = arith.constant 0 : index
    %c0_10 = arith.constant 0 : index
    %7 = vector.load %arg5[%c0_8, %c0_9, %c0_10] : memref<1x128x128xi8, #tpu.memory_space<vmem>>, vector<1x128x128xi8>
    %8 = vector.shape_cast %7 : vector<1x128x128xi8> to vector<128x128xi8>
    %9 = arith.sitofp %8 : vector<128x128xi8> to vector<128x128xbf16>
    %c0_11 = arith.constant 0 : index
    %c0_12 = arith.constant 0 : index
    %10 = vector.load %arg6[%c0_11, %c0_12] : memref<16x128xf32, #tpu.memory_space<vmem>>, vector<16x128xf32>
    %cst = arith.constant dense<0.000000e+00> : vector<128x128xf32>
    %11 = tpu.matmul %1, %10, %cst {dimension_numbers = #tpu.dot_dimension_numbers<[1], [0], [0], [1], [0, 0, 1, 1], [], []>} : vector<128x16xf32>, vector<16x128xf32>, vector<128x128xf32> -> vector<128x128xf32>
    %c0_13 = arith.constant 0 : index
    %c0_14 = arith.constant 0 : index
    %12 = vector.load %arg7[%c0_13, %c0_14] : memref<1x128xf32, #tpu.memory_space<vmem>>, vector<1x128xf32>
    %13 = vector.broadcast %12 : vector<1x128xf32> to vector<128x128xf32>
    %14 = arith.addf %11, %13 : vector<128x128xf32>
    %cst_15 = arith.constant 0.000000e+00 : f32
    %15 = vector.broadcast %cst_15 : f32 to vector<128x128xf32>
    %16 = arith.maximumf %14, %15 : vector<128x128xf32>
    %c0_16 = arith.constant 0 : index
    %c0_17 = arith.constant 0 : index
    %17 = vector.load %arg8[%c0_16, %c0_17] : memref<8x128xf32, #tpu.memory_space<vmem>>, vector<8x128xf32>
    %cst_18 = arith.constant dense<0.000000e+00> : vector<128x128xf32>
    %18 = tpu.matmul %3, %17, %cst_18 {dimension_numbers = #tpu.dot_dimension_numbers<[1], [0], [0], [1], [0, 0, 1, 1], [], []>} : vector<128x8xf32>, vector<8x128xf32>, vector<128x128xf32> -> vector<128x128xf32>
    %c0_19 = arith.constant 0 : index
    %c0_20 = arith.constant 0 : index
    %19 = vector.load %arg9[%c0_19, %c0_20] : memref<1x128xf32, #tpu.memory_space<vmem>>, vector<1x128xf32>
    %20 = vector.broadcast %19 : vector<1x128xf32> to vector<128x128xf32>
    %21 = arith.addf %18, %20 : vector<128x128xf32>
    %22 = arith.truncf %16 : vector<128x128xf32> to vector<128x128xbf16>
    %cst_21 = arith.constant dense<0.000000e+00> : vector<128x128xf32>
    %23 = tpu.matmul %6, %22, %cst_21 {dimension_numbers = #tpu.dot_dimension_numbers<[1], [0], [0], [1], [0, 0, 1, 1], [], []>} : vector<128x128xbf16>, vector<128x128xbf16>, vector<128x128xf32> -> vector<128x128xf32>
    %24 = arith.addf %23, %21 : vector<128x128xf32>
    %cst_22 = arith.constant 0.000000e+00 : f32
    %25 = vector.broadcast %cst_22 : f32 to vector<128x128xf32>
    %26 = arith.maximumf %24, %25 : vector<128x128xf32>
    %27 = arith.truncf %26 : vector<128x128xf32> to vector<128x128xbf16>
    %cst_23 = arith.constant dense<0.000000e+00> : vector<128x128xf32>
    %28 = tpu.matmul %9, %27, %cst_23 {dimension_numbers = #tpu.dot_dimension_numbers<[0], [0], [1], [1], [0, 1, 1, 1], [], []>} : vector<128x128xbf16>, vector<128x128xbf16>, vector<128x128xf32> -> vector<128x128xf32>
    %29 = arith.addf %16, %28 : vector<128x128xf32>
    %c0_24 = arith.constant 0 : index
    %c0_25 = arith.constant 0 : index
    %c0_26 = arith.constant 0 : index
    %30 = vector.load %arg10[%c0_24, %c0_25, %c0_26] : memref<3x128x128xf32, #tpu.memory_space<vmem>>, vector<1x128x128xf32>
    %31 = vector.shape_cast %30 : vector<1x128x128xf32> to vector<128x128xf32>
    %cst_27 = arith.constant dense<0.000000e+00> : vector<128x128xf32>
    %32 = tpu.matmul %29, %31, %cst_27 {dimension_numbers = #tpu.dot_dimension_numbers<[1], [0], [0], [1], [0, 0, 1, 1], [], []>} : vector<128x128xf32>, vector<128x128xf32>, vector<128x128xf32> -> vector<128x128xf32>
    %c0_28 = arith.constant 0 : index
    %c0_29 = arith.constant 0 : index
    %c0_30 = arith.constant 0 : index
    %33 = vector.load %arg11[%c0_28, %c0_29, %c0_30] : memref<3x1x128xf32, #tpu.memory_space<vmem>>, vector<1x1x128xf32>
    %34 = vector.shape_cast %33 : vector<1x1x128xf32> to vector<1x128xf32>
    %35 = vector.broadcast %34 : vector<1x128xf32> to vector<128x128xf32>
    %36 = arith.addf %32, %35 : vector<128x128xf32>
    %cst_31 = arith.constant 0.000000e+00 : f32
    %37 = vector.broadcast %cst_31 : f32 to vector<128x128xf32>
    %38 = arith.maximumf %36, %37 : vector<128x128xf32>
    %c0_32 = arith.constant 0 : index
    %c0_33 = arith.constant 0 : index
    %c0_34 = arith.constant 0 : index
    %39 = vector.load %arg12[%c0_32, %c0_33, %c0_34] : memref<3x128x128xf32, #tpu.memory_space<vmem>>, vector<1x128x128xf32>
    %40 = vector.shape_cast %39 : vector<1x128x128xf32> to vector<128x128xf32>
    %cst_35 = arith.constant dense<0.000000e+00> : vector<128x128xf32>
    %41 = tpu.matmul %38, %40, %cst_35 {dimension_numbers = #tpu.dot_dimension_numbers<[1], [0], [0], [1], [0, 0, 1, 1], [], []>} : vector<128x128xf32>, vector<128x128xf32>, vector<128x128xf32> -> vector<128x128xf32>
    %c0_36 = arith.constant 0 : index
    %c0_37 = arith.constant 0 : index
    %c0_38 = arith.constant 0 : index
    %42 = vector.load %arg13[%c0_36, %c0_37, %c0_38] : memref<3x1x128xf32, #tpu.memory_space<vmem>>, vector<1x1x128xf32>
    %43 = vector.shape_cast %42 : vector<1x1x128xf32> to vector<1x128xf32>
    %44 = vector.broadcast %43 : vector<1x128xf32> to vector<128x128xf32>
    %45 = arith.addf %41, %44 : vector<128x128xf32>
    %cst_39 = arith.constant 0.000000e+00 : f32
    %46 = vector.broadcast %cst_39 : f32 to vector<128x128xf32>
    %47 = arith.maximumf %45, %46 : vector<128x128xf32>
    %48 = arith.truncf %47 : vector<128x128xf32> to vector<128x128xbf16>
    %cst_40 = arith.constant dense<0.000000e+00> : vector<128x128xf32>
    %49 = tpu.matmul %6, %48, %cst_40 {dimension_numbers = #tpu.dot_dimension_numbers<[1], [0], [0], [1], [0, 0, 1, 1], [], []>} : vector<128x128xbf16>, vector<128x128xbf16>, vector<128x128xf32> -> vector<128x128xf32>
    %50 = arith.addf %49, %21 : vector<128x128xf32>
    %cst_41 = arith.constant 0.000000e+00 : f32
    %51 = vector.broadcast %cst_41 : f32 to vector<128x128xf32>
    %52 = arith.maximumf %50, %51 : vector<128x128xf32>
    %53 = arith.truncf %52 : vector<128x128xf32> to vector<128x128xbf16>
    %cst_42 = arith.constant dense<0.000000e+00> : vector<128x128xf32>
    %54 = tpu.matmul %9, %53, %cst_42 {dimension_numbers = #tpu.dot_dimension_numbers<[0], [0], [1], [1], [0, 1, 1, 1], [], []>} : vector<128x128xbf16>, vector<128x128xbf16>, vector<128x128xf32> -> vector<128x128xf32>
    %55 = arith.addf %47, %54 : vector<128x128xf32>
    %c1 = arith.constant 1 : index
    %c0_43 = arith.constant 0 : index
    %c0_44 = arith.constant 0 : index
    %56 = vector.load %arg10[%c1, %c0_43, %c0_44] : memref<3x128x128xf32, #tpu.memory_space<vmem>>, vector<1x128x128xf32>
    %57 = vector.shape_cast %56 : vector<1x128x128xf32> to vector<128x128xf32>
    %cst_45 = arith.constant dense<0.000000e+00> : vector<128x128xf32>
    %58 = tpu.matmul %55, %57, %cst_45 {dimension_numbers = #tpu.dot_dimension_numbers<[1], [0], [0], [1], [0, 0, 1, 1], [], []>} : vector<128x128xf32>, vector<128x128xf32>, vector<128x128xf32> -> vector<128x128xf32>
    %c1_46 = arith.constant 1 : index
    %c0_47 = arith.constant 0 : index
    %c0_48 = arith.constant 0 : index
    %59 = vector.load %arg11[%c1_46, %c0_47, %c0_48] : memref<3x1x128xf32, #tpu.memory_space<vmem>>, vector<1x1x128xf32>
    %60 = vector.shape_cast %59 : vector<1x1x128xf32> to vector<1x128xf32>
    %61 = vector.broadcast %60 : vector<1x128xf32> to vector<128x128xf32>
    %62 = arith.addf %58, %61 : vector<128x128xf32>
    %cst_49 = arith.constant 0.000000e+00 : f32
    %63 = vector.broadcast %cst_49 : f32 to vector<128x128xf32>
    %64 = arith.maximumf %62, %63 : vector<128x128xf32>
    %c1_50 = arith.constant 1 : index
    %c0_51 = arith.constant 0 : index
    %c0_52 = arith.constant 0 : index
    %65 = vector.load %arg12[%c1_50, %c0_51, %c0_52] : memref<3x128x128xf32, #tpu.memory_space<vmem>>, vector<1x128x128xf32>
    %66 = vector.shape_cast %65 : vector<1x128x128xf32> to vector<128x128xf32>
    %cst_53 = arith.constant dense<0.000000e+00> : vector<128x128xf32>
    %67 = tpu.matmul %64, %66, %cst_53 {dimension_numbers = #tpu.dot_dimension_numbers<[1], [0], [0], [1], [0, 0, 1, 1], [], []>} : vector<128x128xf32>, vector<128x128xf32>, vector<128x128xf32> -> vector<128x128xf32>
    %c1_54 = arith.constant 1 : index
    %c0_55 = arith.constant 0 : index
    %c0_56 = arith.constant 0 : index
    %68 = vector.load %arg13[%c1_54, %c0_55, %c0_56] : memref<3x1x128xf32, #tpu.memory_space<vmem>>, vector<1x1x128xf32>
    %69 = vector.shape_cast %68 : vector<1x1x128xf32> to vector<1x128xf32>
    %70 = vector.broadcast %69 : vector<1x128xf32> to vector<128x128xf32>
    %71 = arith.addf %67, %70 : vector<128x128xf32>
    %cst_57 = arith.constant 0.000000e+00 : f32
    %72 = vector.broadcast %cst_57 : f32 to vector<128x128xf32>
    %73 = arith.maximumf %71, %72 : vector<128x128xf32>
    %74 = arith.truncf %73 : vector<128x128xf32> to vector<128x128xbf16>
    %cst_58 = arith.constant dense<0.000000e+00> : vector<128x128xf32>
    %75 = tpu.matmul %6, %74, %cst_58 {dimension_numbers = #tpu.dot_dimension_numbers<[1], [0], [0], [1], [0, 0, 1, 1], [], []>} : vector<128x128xbf16>, vector<128x128xbf16>, vector<128x128xf32> -> vector<128x128xf32>
    %76 = arith.addf %75, %21 : vector<128x128xf32>
    %cst_59 = arith.constant 0.000000e+00 : f32
    %77 = vector.broadcast %cst_59 : f32 to vector<128x128xf32>
    %78 = arith.maximumf %76, %77 : vector<128x128xf32>
    %79 = arith.truncf %78 : vector<128x128xf32> to vector<128x128xbf16>
    %cst_60 = arith.constant dense<0.000000e+00> : vector<128x128xf32>
    %80 = tpu.matmul %9, %79, %cst_60 {dimension_numbers = #tpu.dot_dimension_numbers<[0], [0], [1], [1], [0, 1, 1, 1], [], []>} : vector<128x128xbf16>, vector<128x128xbf16>, vector<128x128xf32> -> vector<128x128xf32>
    %81 = arith.addf %73, %80 : vector<128x128xf32>
    %c2 = arith.constant 2 : index
    %c0_61 = arith.constant 0 : index
    %c0_62 = arith.constant 0 : index
    %82 = vector.load %arg10[%c2, %c0_61, %c0_62] : memref<3x128x128xf32, #tpu.memory_space<vmem>>, vector<1x128x128xf32>
    %83 = vector.shape_cast %82 : vector<1x128x128xf32> to vector<128x128xf32>
    %cst_63 = arith.constant dense<0.000000e+00> : vector<128x128xf32>
    %84 = tpu.matmul %81, %83, %cst_63 {dimension_numbers = #tpu.dot_dimension_numbers<[1], [0], [0], [1], [0, 0, 1, 1], [], []>} : vector<128x128xf32>, vector<128x128xf32>, vector<128x128xf32> -> vector<128x128xf32>
    %c2_64 = arith.constant 2 : index
    %c0_65 = arith.constant 0 : index
    %c0_66 = arith.constant 0 : index
    %85 = vector.load %arg11[%c2_64, %c0_65, %c0_66] : memref<3x1x128xf32, #tpu.memory_space<vmem>>, vector<1x1x128xf32>
    %86 = vector.shape_cast %85 : vector<1x1x128xf32> to vector<1x128xf32>
    %87 = vector.broadcast %86 : vector<1x128xf32> to vector<128x128xf32>
    %88 = arith.addf %84, %87 : vector<128x128xf32>
    %cst_67 = arith.constant 0.000000e+00 : f32
    %89 = vector.broadcast %cst_67 : f32 to vector<128x128xf32>
    %90 = arith.maximumf %88, %89 : vector<128x128xf32>
    %c2_68 = arith.constant 2 : index
    %c0_69 = arith.constant 0 : index
    %c0_70 = arith.constant 0 : index
    %91 = vector.load %arg12[%c2_68, %c0_69, %c0_70] : memref<3x128x128xf32, #tpu.memory_space<vmem>>, vector<1x128x128xf32>
    %92 = vector.shape_cast %91 : vector<1x128x128xf32> to vector<128x128xf32>
    %cst_71 = arith.constant dense<0.000000e+00> : vector<128x128xf32>
    %93 = tpu.matmul %90, %92, %cst_71 {dimension_numbers = #tpu.dot_dimension_numbers<[1], [0], [0], [1], [0, 0, 1, 1], [], []>} : vector<128x128xf32>, vector<128x128xf32>, vector<128x128xf32> -> vector<128x128xf32>
    %c2_72 = arith.constant 2 : index
    %c0_73 = arith.constant 0 : index
    %c0_74 = arith.constant 0 : index
    %94 = vector.load %arg13[%c2_72, %c0_73, %c0_74] : memref<3x1x128xf32, #tpu.memory_space<vmem>>, vector<1x1x128xf32>
    %95 = vector.shape_cast %94 : vector<1x1x128xf32> to vector<1x128xf32>
    %96 = vector.broadcast %95 : vector<1x128xf32> to vector<128x128xf32>
    %97 = arith.addf %93, %96 : vector<128x128xf32>
    %98 = arith.index_cast %arg0 : i32 to index
    %99 = memref.load %arg1[%98] : memref<6xi32, #tpu.memory_space<smem>>
    %100 = tpu.iota {dimensions = array<i32: 0>} : vector<128x128xi32>
    %101 = vector.broadcast %99 : i32 to vector<128x128xi32>
    %102 = arith.cmpi slt, %100, %101 : vector<128x128xi32>
    %cst_75 = arith.constant 0.000000e+00 : f32
    %103 = vector.broadcast %cst_75 : f32 to vector<128x128xf32>
    %104 = arith.select %102, %97, %103 : vector<128x128xi1>, vector<128x128xf32>
    %cst_76 = arith.constant dense<0.000000e+00> : vector<128xf32>
    %105 = vector.multi_reduction <add>, %104, %cst_76 [0] : vector<128x128xf32> to vector<128xf32>
    %106 = vector.shape_cast %105 : vector<128xf32> to vector<1x128xf32>
    %107 = arith.sitofp %99 : i32 to f32
    %cst_77 = arith.constant 1.000000e+00 : f32
    %108 = arith.divf %cst_77, %107 : f32
    %109 = vector.broadcast %108 : f32 to vector<1x128xf32>
    %110 = arith.mulf %106, %109 : vector<1x128xf32>
    %c0_78 = arith.constant 0 : index
    %c0_79 = arith.constant 0 : index
    %111 = vector.load %arg14[%c0_78, %c0_79] : memref<128x128xf32, #tpu.memory_space<vmem>>, vector<128x128xf32>
    %cst_80 = arith.constant dense<0.000000e+00> : vector<1x128xf32>
    %112 = tpu.matmul %110, %111, %cst_80 {dimension_numbers = #tpu.dot_dimension_numbers<[1], [0], [0], [1], [0, 0, 1, 1], [], []>} : vector<1x128xf32>, vector<128x128xf32>, vector<1x128xf32> -> vector<1x128xf32>
    %c0_81 = arith.constant 0 : index
    %c0_82 = arith.constant 0 : index
    %113 = vector.load %arg15[%c0_81, %c0_82] : memref<1x128xf32, #tpu.memory_space<vmem>>, vector<1x128xf32>
    %114 = arith.addf %112, %113 : vector<1x128xf32>
    %cst_83 = arith.constant 0.000000e+00 : f32
    %115 = vector.broadcast %cst_83 : f32 to vector<1x128xf32>
    %116 = arith.cmpf ogt, %114, %115 : vector<1x128xf32>
    %c0_84 = arith.constant 0 : index
    %c0_85 = arith.constant 0 : index
    %117 = vector.load %arg16[%c0_84, %c0_85] : memref<1x128xf32, #tpu.memory_space<vmem>>, vector<1x128xf32>
    %118 = arith.mulf %117, %114 : vector<1x128xf32>
    %119 = arith.select %116, %114, %118 : vector<1x128xi1>, vector<1x128xf32>
    %c0_86 = arith.constant 0 : index
    %c0_87 = arith.constant 0 : index
    %c0_88 = arith.constant 0 : index
    %120 = vector.load %arg17[%c0_86, %c0_87, %c0_88] : memref<1x1x128xf32, #tpu.memory_space<vmem>>, vector<1x1x128xf32>
    %121 = vector.shape_cast %120 : vector<1x1x128xf32> to vector<1x128xf32>
    %122 = vector.shape_cast %119 : vector<1x128xf32> to vector<1x1x128xf32>
    tpu.vector_store %arg17[%c0_86, %c0_87, %c0_88], %122 {strides = array<i32>} : memref<1x1x128xf32, #tpu.memory_space<vmem>>, vector<1x1x128xf32>,
    return
  }
  func.func @transform_0(%arg0: i32, %arg1: memref<6xi32, #tpu.memory_space<smem>>) -> (i32, i32, i32) {
    %c0_i32 = arith.constant 0 : i32
    %c0_i32_0 = arith.constant 0 : i32
    %c0_i32_1 = arith.constant 0 : i32
    return %arg0, %c0_i32, %c0_i32_0 : i32, i32, i32
  }
  func.func @transform_1(%arg0: i32, %arg1: memref<6xi32, #tpu.memory_space<smem>>) -> (i32, i32, i32) {
    %c0_i32 = arith.constant 0 : i32
    %c0_i32_0 = arith.constant 0 : i32
    %c0_i32_1 = arith.constant 0 : i32
    return %arg0, %c0_i32, %c0_i32_0 : i32, i32, i32
  }
  func.func @transform_2(%arg0: i32, %arg1: memref<6xi32, #tpu.memory_space<smem>>) -> (i32, i32, i32) {
    %c0_i32 = arith.constant 0 : i32
    %c0_i32_0 = arith.constant 0 : i32
    %c0_i32_1 = arith.constant 0 : i32
    return %arg0, %c0_i32, %c0_i32_0 : i32, i32, i32
  }
  func.func @transform_3(%arg0: i32, %arg1: memref<6xi32, #tpu.memory_space<smem>>) -> (i32, i32, i32) {
    %c0_i32 = arith.constant 0 : i32
    %c0_i32_0 = arith.constant 0 : i32
    %c0_i32_1 = arith.constant 0 : i32
    return %arg0, %c0_i32, %c0_i32_0 : i32, i32, i32
  }
  func.func @transform_4(%arg0: i32, %arg1: memref<6xi32, #tpu.memory_space<smem>>) -> (i32, i32) {
    %c0_i32 = arith.constant 0 : i32
    %c0_i32_0 = arith.constant 0 : i32
    %c0_i32_1 = arith.constant 0 : i32
    return %c0_i32, %c0_i32_0 : i32, i32
  }
  func.func @transform_5(%arg0: i32, %arg1: memref<6xi32, #tpu.memory_space<smem>>) -> (i32, i32) {
    %c0_i32 = arith.constant 0 : i32
    %c0_i32_0 = arith.constant 0 : i32
    %c0_i32_1 = arith.constant 0 : i32
    return %c0_i32, %c0_i32_0 : i32, i32
  }
  func.func @transform_6(%arg0: i32, %arg1: memref<6xi32, #tpu.memory_space<smem>>) -> (i32, i32) {
    %c0_i32 = arith.constant 0 : i32
    %c0_i32_0 = arith.constant 0 : i32
    %c0_i32_1 = arith.constant 0 : i32
    return %c0_i32, %c0_i32_0 : i32, i32
  }
  func.func @transform_7(%arg0: i32, %arg1: memref<6xi32, #tpu.memory_space<smem>>) -> (i32, i32) {
    %c0_i32 = arith.constant 0 : i32
    %c0_i32_0 = arith.constant 0 : i32
    %c0_i32_1 = arith.constant 0 : i32
    return %c0_i32, %c0_i32_0 : i32, i32
  }
  func.func @transform_8(%arg0: i32, %arg1: memref<6xi32, #tpu.memory_space<smem>>) -> (i32, i32, i32) {
    %c0_i32 = arith.constant 0 : i32
    %c0_i32_0 = arith.constant 0 : i32
    %c0_i32_1 = arith.constant 0 : i32
    %c0_i32_2 = arith.constant 0 : i32
    return %c0_i32, %c0_i32_0, %c0_i32_1 : i32, i32, i32
  }
  func.func @transform_9(%arg0: i32, %arg1: memref<6xi32, #tpu.memory_space<smem>>) -> (i32, i32, i32) {
    %c0_i32 = arith.constant 0 : i32
    %c0_i32_0 = arith.constant 0 : i32
    %c0_i32_1 = arith.constant 0 : i32
    %c0_i32_2 = arith.constant 0 : i32
    return %c0_i32, %c0_i32_0, %c0_i32_1 : i32, i32, i32
  }
  func.func @transform_10(%arg0: i32, %arg1: memref<6xi32, #tpu.memory_space<smem>>) -> (i32, i32, i32) {
    %c0_i32 = arith.constant 0 : i32
    %c0_i32_0 = arith.constant 0 : i32
    %c0_i32_1 = arith.constant 0 : i32
    %c0_i32_2 = arith.constant 0 : i32
    return %c0_i32, %c0_i32_0, %c0_i32_1 : i32, i32, i32
  }
  func.func @transform_11(%arg0: i32, %arg1: memref<6xi32, #tpu.memory_space<smem>>) -> (i32, i32, i32) {
    %c0_i32 = arith.constant 0 : i32
    %c0_i32_0 = arith.constant 0 : i32
    %c0_i32_1 = arith.constant 0 : i32
    %c0_i32_2 = arith.constant 0 : i32
    return %c0_i32, %c0_i32_0, %c0_i32_1 : i32, i32, i32
  }
  func.func @transform_12(%arg0: i32, %arg1: memref<6xi32, #tpu.memory_space<smem>>) -> (i32, i32) {
    %c0_i32 = arith.constant 0 : i32
    %c0_i32_0 = arith.constant 0 : i32
    %c0_i32_1 = arith.constant 0 : i32
    return %c0_i32, %c0_i32_0 : i32, i32
  }
  func.func @transform_13(%arg0: i32, %arg1: memref<6xi32, #tpu.memory_space<smem>>) -> (i32, i32) {
    %c0_i32 = arith.constant 0 : i32
    %c0_i32_0 = arith.constant 0 : i32
    %c0_i32_1 = arith.constant 0 : i32
    return %c0_i32, %c0_i32_0 : i32, i32
  }
  func.func @transform_14(%arg0: i32, %arg1: memref<6xi32, #tpu.memory_space<smem>>) -> (i32, i32) {
    %c0_i32 = arith.constant 0 : i32
    %c0_i32_0 = arith.constant 0 : i32
    %c0_i32_1 = arith.constant 0 : i32
    return %c0_i32, %c0_i32_0 : i32, i32
  }
  func.func @transform_15(%arg0: i32, %arg1: memref<6xi32, #tpu.memory_space<smem>>) -> (i32, i32, i32) {
    %c0_i32 = arith.constant 0 : i32
    %c0_i32_0 = arith.constant 0 : i32
    %c0_i32_1 = arith.constant 0 : i32
    return %arg0, %c0_i32, %c0_i32_0 : i32, i32, i32
  }
}

</mosaic_0001>

<bundles_post_ra>
// kernel: tpu_custom_call.1
= control target key start
LH: loop header
LB: loop body
LE: loop exit
PB: predicated region body
PF: predicated region fallthrough
CT: control target
= control target key end

     0   :  { %s5904_s0 = inlined_call_operand.vmem [shape: s32[6], index: 0, kind: input, shape index: {}]   ;;  %s5905_s1 = inlined_call_operand.vmem [shape: f32[6,128,16], index: 1, kind: input, shape index: {}]   ;;  %s5906_s2 = inlined_call_operand.vmem [shape: f32[6,128,8], index: 2, kind: input, shape index: {}]   ;;  %s5907_s3 = inlined_call_operand.vmem [shape: s8[6,128,128], index: 3, kind: input, shape index: {}]   ;;  %s5908_s4 = inlined_call_operand.vmem [shape: s8[6,128,128], index: 4, kind: input, shape index: {}]   ;;  %s5909_s5 = inlined_call_operand.vmem [shape: f32[16,128], index: 5, kind: input, shape index: {}]   ;;  %s5910_s6 = inlined_call_operand.vmem [shape: f32[1,128], index: 6, kind: input, shape index: {}]   ;;  %s5911_s7 = inlined_call_operand.vmem [shape: f32[8,128], index: 7, kind: input, shape index: {}]   ;;  %s5912_s8 = inlined_call_operand.vmem [shape: f32[1,128], index: 8, kind: input, shape index: {}]   ;;  %s5913_s9 = inlined_call_operand.vmem [shape: f32[3,128,128], index: 9, kind: input, shape index: {}]   ;;  %s5914_s10 = inlined_call_operand.vmem [shape: f32[3,1,128], index: 10, kind: input, shape index: {}]   ;;  %s5915_s11 = inlined_call_operand.vmem [shape: f32[3,128,128], index: 11, kind: input, shape index: {}]   ;;  %s5916_s12 = inlined_call_operand.vmem [shape: f32[3,1,128], index: 12, kind: input, shape index: {}]   ;;  %s5917_s13 = inlined_call_operand.vmem [shape: f32[128,128], index: 13, kind: input, shape index: {}]   ;;  %s5918_s14 = inlined_call_operand.vmem [shape: f32[1,128], index: 14, kind: input, shape index: {}]   ;;  %s5919_s15 = inlined_call_operand.vmem [shape: f32[1,128], index: 15, kind: input, shape index: {}]   ;;  %s5920_s16 = inlined_call_operand.hbm [shape: f32[6,1,128], index: 16, kind: output, shape index: {}]  }
   0x1   :  { %5961 = sst [smem:[#allocation11_spill]] %s5904_s0 }
   0x2   :  { %5962 = sst [smem:[#allocation12_spill]] %s5905_s1  ;;  %s5968_s23 = sld [smem:[#allocation11_spill]] }
   0x3   :  { %5963 = sst [smem:[#allocation13_spill]] %s5906_s2 }
   0x4   :  { %5964 = sst [smem:[#allocation14_spill]] %s5907_s3 }
   0x5   :  { %5965 = sst [smem:[#allocation15_spill]] %s5908_s4 }
   0x6   :  { %5966 = sst [smem:[#allocation16_spill]] %s5909_s5 }
   0x7   :  { %5967 = sst [smem:[#allocation17_spill]] %s5914_s10 }
   0x8   :  { %s21_s10 = sshll.u32 %s5968_s23, 4  ;;  %s22_s10 = int_to_ptr.vmem [resolvable:$true] %s21_s10 }
   0x9   :  { %s4500_s24 = scalar_lea.vmem %s22_s10, 16  ;;  %p4505_p1 = scmp.lt.s32.totalorder %s22_s10, %s22_s10 }
   0xa   :  { %p4501_p0 = scmp.ne.s32.totalorder %s22_s10, %s4500_s24  ;;  %p4506_p2 = scmp.lt.s32.totalorder %s4500_s24, %s4500_s24 }
   0xc   :  { %p4507_p3 = por %p4506_p2, %p4505_p1 }
   0xe   :  { %p4508_p4 = pnand %p4507_p3, %p4501_p0 }
  0x10   :  { %4511 = shalt.err (!%p4508_p4)  }
  0x11   :  { %s4578_s25 = smov [#allocation3]  }
  0x12   :  { %24 = dma.vmem_to_smem %s22_s10, 16, %s4578_s25, [#allocation2] }
  0x13   :  { %4556 = dma.done.wait [#allocation2], 16 }
  0x14   :  { %4557 = vsyncadd [#allocation2], 4294967280 }
  0x15   :  { %26 = sfence }
  0x16   :  { %27 = vsyncpa [#allocation5], 0 }
  0x17   :  { %29 = vsyncpa [#allocation5 + $0x1], 0  ;;  %s4671_s26 = smov 0   ;;  %s4673_s27 = smov 0  }
  0x18   :  { %s4675_s28 = smov 0   ;;  %s4677_s29 = smov 0  }
  0x19 LB: > { %s4692_s10 = sadd.s32 4294967295, %s4576_s29   ;;  %s3149_s30 = sadd.s32 4294967294, %s4576_s29   ;;  %s4576_s29 = sphi %s4677_s29, %s6022_s29   ;;  %s4572_s28 = sphi %s4675_s28, %s6021_s28   ;;  %s4568_s27 = sphi %s4673_s27, %s6020_s27   ;;  %s4564_s26 = sphi %s4671_s26, %s6019_s26  }
  0x1a   : > { %s4696_s0 = sadd.s32 1, %s4576_s29   ;;  %s377_s17 = sadd.s32 1, %s4572_s28 }
  0x1b   : > { %s374_s18 = ssub.s32 %s4576_s29, %s4696_s0  ;;  %p387_p5 = scmp.ne.s32.totalorder %s4572_s28, %s4568_s27 }
  0x1c   : > { %p375_p6 = scmp.eq.s32.totalorder %s374_s18, 0  ;;  %p388_p7 = scmp.eq.s32.totalorder %s4692_s10, 5 }
  0x1d   : > { %p393_p8 = scmp.ne.s32.totalorder %s4568_s27, %s4564_s26  ;;  %p394_p9 = scmp.eq.s32.totalorder %s3149_s30, 5 }
  0x1e   : > { %s4707_s19 = scalar_select %p375_p6, %s4572_s28, %s377_s17  }
  0x1f   : > { %p4709_p10 = por %p388_p7, %p387_p5  ;;  %p4713_p11 = por %p394_p9, %p393_p8 }
  0x20   : > { %p3152_p12 = scmp.ge.s32.totalorder %s4576_s29, 1  ;;  %p477_p13 = scmp.lt.s32.totalorder %s4576_s29, 7 }
  0x22   : > { %p478_p0 = pnand %p3152_p12, %p477_p13 }
  0x24   : > { %481 = sbr.rel (%p478_p0) target bundleno = 3366 (0xd26), region = 80 }
  0x2b   : > { %s5971_s5 = sld [smem:[#allocation16_spill]]  ;;  %p539_p1 = scmp.lt.s32.totalorder %s4692_s10, 5  ;;  %vm625_vm0 = vcmask 130048   ;;  %v835_v19 = vld [vmem:[%s5911_s7] sm:$0xff]  ;;  %vm843_vm1 = vcmask 64512   ;;  %vm4580_vm2 = vmmov 0  }
  0x2c   : > { %s5972_s1 = sld [smem:[#allocation12_spill]]  ;;  %s5973_s2 = sld [smem:[#allocation13_spill]]  ;;  %3644 = vmatprep.subr.mxu1 %v835_v19  ;;  %v4830_v50 = vld [vmem:[%s5910_s6] ss:$0 sm:$0xff] }
  0x2d   : > { %s4727_s30 = scalar_select %p539_p1, %s4692_s10, 5  ;;  %3645 = vmatpush3.msra.mxu1 %v835_v19 }
  0x2e   : > { %s5974_s3 = sld [smem:[#allocation14_spill]]  ;;  %s5975_s4 = sld [smem:[#allocation15_spill]] }
  0x2f   : > { %s3272_s17 = sshll.u32 %s4727_s30, 7  ;;  %s5739_s18 = sld [smem:[#allocation3 + %s4692_s10]] }
  0x31   : > { %v616_v0 = vld [vmem:[%s5971_s5] sm:$0xff]  ;;  %v617_v1 = vld [vmem:[%s5971_s5 + $0x8] sm:$0xff] }
  0x32   : > { %v4233_v2 = vpack.c.bf16 %v617_v1, %v616_v0  ;;  %s4735_s23 = scalar_lea.vmem %s5972_s1, %s3272_s17  ;;  %s4777_s1 = scalar_lea.vmem %s5973_s2, %s3272_s17 }
  0x33   : > { %v560_v3 = vld [vmem:[%s4735_s23] sm:$0xff]  ;;  %v561_v4 = vld [vmem:[%s4735_s23 + $0x8] sm:$0xff]  ;;  %v562_v5 = vld [vmem:[%s4735_s23 + $0x10] sm:$0xff]  ;;  %s3274_s17 = sshll.u32 %s4727_s30, 5  ;;  %s5991_s30 = sld [smem:[#allocation17_spill]] }
  0x34   : > { %4234 = vmatprep.subr.bf16.mxu0 %v4233_v2  ;;  %3620 = vmatprep.mubr.msk.f32.mxu0 %vm625_vm0, %v560_v3  ;;  %v563_v6 = vld [vmem:[%s4735_s23 + $0x18] sm:$0xff]  ;;  %v564_v7 = vld [vmem:[%s4735_s23 + $0x20] sm:$0xff]  ;;  %v565_v8 = vld [vmem:[%s4735_s23 + $0x28] sm:$0xff]  ;;  %s4815_s25 = scalar_lea.vmem %s5974_s3, %s3274_s17  ;;  %s3269_s3 = sshll.u32 %s4692_s10, 4 }
  0x35   : > { %4236 = vmatpush3.bf16.msra.mxu0 %v4233_v2  ;;  %v566_v9 = vld [vmem:[%s4735_s23 + $0x30] sm:$0xff]  ;;  %v567_v10 = vld [vmem:[%s4735_s23 + $0x38] sm:$0xff]  ;;  %v568_v11 = vld [vmem:[%s4735_s23 + $0x40] sm:$0xff]  ;;  %s2947_s22 = scvt.s32.f32 %s5739_s18  ;;  %s4582_s10 = smov [#allocation4]  }
  0x36   : > { %v569_v12 = vld [vmem:[%s4735_s23 + $0x48] sm:$0xff]  ;;  %v570_v13 = vld [vmem:[%s4735_s23 + $0x50] sm:$0xff]  ;;  %v571_v14 = vld [vmem:[%s4735_s23 + $0x58] sm:$0xff]  ;;  %s4516_s2 = sshll.u32 %s4582_s10, 4  ;;  %s4517_s2 = int_to_ptr.vmem [resolvable:$false] %s4516_s2 }
  0x37   : > { %v572_v15 = vld [vmem:[%s4735_s23 + $0x60] sm:$0xff]  ;;  %v573_v16 = vld [vmem:[%s4735_s23 + $0x68] sm:$0xff]  ;;  %v574_v17 = vld [vmem:[%s4735_s23 + $0x70] sm:$0xff] }
  0x38   : > { %3621 = vmatmul.mubr.msk.f32.vlgmr.msra.gmra.mrb[0].mxu0 %vm625_vm0, %v561_v4  ;;  %v575_v18 = vld [vmem:[%s4735_s23 + $0x78] sm:$0xff]  ;;  %v576_v20 = vld [vmem:[%s4777_s1] sm:$0xff]  ;;  %v577_v21 = vld [vmem:[%s4777_s1 + $0x8] sm:$0xff] }
  0x39   : > { %3623 = vmatprep.mubr.msk.f32.mxu0 %vm625_vm0, %v562_v5  ;;  %3646 = vmatprep.mubr.msk.f32.mxu1 %vm843_vm1, %v576_v20  ;;  %v578_v22 = vld [vmem:[%s4777_s1 + $0x10] sm:$0xff]  ;;  %v579_v23 = vld [vmem:[%s4777_s1 + $0x18] sm:$0xff]  ;;  %v580_v24 = vld [vmem:[%s4777_s1 + $0x20] sm:$0xff] }
  0x3a   : > { %3647 = vmatmul.mubr.msk.f32.vlgmr.msra.gmra.mrb[0].mxu1 %vm843_vm1, %v577_v21  ;;  %v581_v25 = vld [vmem:[%s4777_s1 + $0x28] sm:$0xff]  ;;  %v582_v26 = vld [vmem:[%s4777_s1 + $0x30] sm:$0xff]  ;;  %v583_v27 = vld [vmem:[%s4777_s1 + $0x38] sm:$0xff] }
  0x3b   : > { %3649 = vmatprep.mubr.msk.f32.mxu1 %vm843_vm1, %v578_v22  ;;  %v584_v28 = vld [vmem:[%s4777_s1 + $0x40] sm:$0xff]  ;;  %v585_v29 = vld [vmem:[%s4777_s1 + $0x48] sm:$0xff]  ;;  %v586_v30 = vld [vmem:[%s4777_s1 + $0x50] sm:$0xff] }
  0x3c   : > { %3624 = vmatmul.mubr.msk.f32.gmra.mrb[2].mxu0 %vm625_vm0, %v563_v6  ;;  %v587_v31 = vld [vmem:[%s4777_s1 + $0x58] sm:$0xff]  ;;  %v588_v32 = vld [vmem:[%s4777_s1 + $0x60] sm:$0xff]  ;;  %v589_v33 = vld [vmem:[%s4777_s1 + $0x68] sm:$0xff] }
  0x3d   : > { %3626 = vmatprep.mubr.msk.f32.mxu0 %vm625_vm0, %v564_v7  ;;  %v590_v34 = vld [vmem:[%s4777_s1 + $0x70] sm:$0xff]  ;;  %v591_v35 = vld [vmem:[%s4777_s1 + $0x78] sm:$0xff]  ;;  %v4818_v36 = vld [vmem:[%s4815_s25] sm:$0xff]  ;;  %s558_s1 = scalar_lea.vmem %s5975_s4, %s3274_s17  ;;  %s4518_s4 = scalar_lea.vmem %s4517_s2, 32 }
  0x3e   : > { %3650 = vmatmul.mubr.msk.f32.gmra.mrb[2].mxu1 %vm843_vm1, %v579_v23  ;;  %v4821_v37 = vunpack.c.l.s8.bf16 %v4818_v36  ;;  %v604_v38 = vld [vmem:[%s558_s1] sm:$0xff]  ;;  %v605_v41 = vld [vmem:[%s558_s1 + $0x8] sm:$0xff]  ;;  %v606_v44 = vld [vmem:[%s558_s1 + $0x10] sm:$0xff] }
  0x3f   : > { %3652 = vmatprep.mubr.msk.f32.mxu1 %vm843_vm1, %v580_v24  ;;  %v608_v39 = vunpack.c.l.s8.bf16 %v604_v38  ;;  %v609_v40 = vunpack.c.h.s8.bf16 %v604_v38  ;;  %v610_v42 = vunpack.c.l.s8.bf16 %v605_v41  ;;  %v611_v43 = vunpack.c.h.s8.bf16 %v605_v41  ;;  %v607_v47 = vld [vmem:[%s558_s1 + $0x18] sm:$0xff] }
  0x40   : > { %3627 = vmatmul.mubr.msk.f32.gmra.mrb[4].mxu0 %vm625_vm0, %v565_v8  ;;  %v612_v45 = vunpack.c.l.s8.bf16 %v606_v44  ;;  %v613_v46 = vunpack.c.h.s8.bf16 %v606_v44  ;;  %v614_v48 = vunpack.c.l.s8.bf16 %v607_v47  ;;  %v615_v49 = vunpack.c.h.s8.bf16 %v607_v47 }
  0x41   : > { %3629 = vmatprep.mubr.msk.f32.mxu0 %vm625_vm0, %v566_v9  ;;  %1166 = vxpose.xlu0.c.b16.start [1/8] %v608_v39, 128 }
  0x42   : > { %3653 = vmatmul.mubr.msk.f32.gmra.mrb[4].mxu1 %vm843_vm1, %v581_v25 }
  0x43   : > { %3655 = vmatprep.mubr.msk.f32.mxu1 %vm843_vm1, %v582_v26 }
  0x44   : > { %3630 = vmatmul.mubr.msk.f32.gmra.mrb[6].mxu0 %vm625_vm0, %v567_v10 }
  0x45   : > { %3632 = vmatprep.mubr.msk.f32.mxu0 %vm625_vm0, %v568_v11  ;;  %1167 = vxpose.xlu0.c.b16.cont [2/8] %v609_v40, 128 }
  0x46   : > { %3656 = vmatmul.mubr.msk.f32.gmra.mrb[6].mxu1 %vm843_vm1, %v583_v27 }
  0x47   : > { %3658 = vmatprep.mubr.msk.f32.mxu1 %vm843_vm1, %v584_v28 }
  0x48   : > { %3633 = vmatmul.mubr.msk.f32.gmra.mrb[8].mxu0 %vm625_vm0, %v569_v12 }
  0x49   : > { %3635 = vmatprep.mubr.msk.f32.mxu0 %vm625_vm0, %v570_v13  ;;  %1168 = vxpose.xlu0.c.b16.cont [3/8] %v610_v42, 128 }
  0x4a   : > { %3659 = vmatmul.mubr.msk.f32.gmra.mrb[8].mxu1 %vm843_vm1, %v585_v29 }
  0x4b   : > { %3661 = vmatprep.mubr.msk.f32.mxu1 %vm843_vm1, %v586_v30 }
  0x4c   : > { %3636 = vmatmul.mubr.msk.f32.gmra.mrb[10].mxu0 %vm625_vm0, %v571_v14 }
  0x4d   : > { %3638 = vmatprep.mubr.msk.f32.mxu0 %vm625_vm0, %v572_v15  ;;  %1169 = vxpose.xlu0.c.b16.cont [4/8] %v611_v43, 128 }
  0x4e   : > { %3662 = vmatmul.mubr.msk.f32.gmra.mrb[10].mxu1 %vm843_vm1, %v587_v31 }
  0x4f   : > { %3664 = vmatprep.mubr.msk.f32.mxu1 %vm843_vm1, %v588_v32 }
  0x50   : > { %3639 = vmatmul.mubr.msk.f32.gmra.mrb[12].mxu0 %vm625_vm0, %v573_v16 }
  0x51   : > { %3641 = vmatprep.mubr.msk.f32.mxu0 %vm625_vm0, %v574_v17  ;;  %1170 = vxpose.xlu0.c.b16.cont [5/8] %v612_v45, 128  ;;  %v593_v45 = vld [vmem:[%s4815_s25 + $0x8] sm:$0xff] }
  0x52   : > { %3665 = vmatmul.mubr.msk.f32.gmra.mrb[12].mxu1 %vm843_vm1, %v589_v33  ;;  %v4932_v47 = vunpack.c.l.s8.bf16 %v593_v45 }
  0x53   : > { %3667 = vmatprep.mubr.msk.f32.mxu1 %vm843_vm1, %v590_v34 }
  0x54   : > { %3642 = vmatmul.mubr.msk.f32.gmra.mrb[14].mxu0 %vm625_vm0, %v575_v18 }
  0x55   : > { %1171 = vxpose.xlu0.c.b16.cont [6/8] %v613_v46, 128  ;;  %v4930_v46 = vunpack.c.h.s8.bf16 %v4818_v36 }
  0x56   : > { %3668 = vmatmul.mubr.msk.f32.gmra.mrb[14].mxu1 %vm843_vm1, %v591_v35 }
  0x57   : > { %3686 = vmatprep.mubr.bf16.mxu1 %v4821_v37 }
  0x59   : > { %1172 = vxpose.xlu0.c.b16.cont [7/8] %v614_v48, 128  ;;  %v594_v48 = vld [vmem:[%s4815_s25 + $0x10] sm:$0xff] }
  0x5d   : > { %1173 = vxpose.xlu0.c.b16.end [8/8] %v615_v49, 128  ;;  %v4937_v49 = vunpack.c.h.s8.bf16 %v593_v45  ;;  %v1298_v45 = vld [vmem:[%s5913_s9 + $0x18] sm:$0xff] }
 0x10b   : > { %v3622_v51 = vpop.f32.mrb[0].mxu0 }
 0x10c   : > { %v4833_v52 = vadd.f32 %v3622_v51, %v4830_v50  ;;  %v740_v53 = vpop.f32.mrb[1].mxu0  ;;  %v595_v51 = vld [vmem:[%s4815_s25 + $0x18] sm:$0xff]  ;;  %s537_s25 = sand.u32 1, %s4568_s27  }
 0x10d   : > { %v4836_v54 = vadd.f32 %v4830_v50, %v740_v53  ;;  %v4944_v53 = vunpack.c.h.s8.bf16 %v594_v48  ;;  %v4946_v36 = vunpack.c.l.s8.bf16 %v595_v51  ;;  %s538_s17 = scalar_lea.vmem [#allocation4], %s537_s25 }
 0x10e   : > { %v820_v55 = vmax.f32 %v4833_v52, 0.0  ;;  %s3058_s23 = sshll.u32 %s538_s17, 4  ;;  %s5864_s23 = int_to_ptr.vmem [resolvable:$true] %s3058_s23 }
 0x10f   : > { %v819_v56 = vmax.f32 %v4836_v54, 0.0  ;;  %v3625_v57 = vpop.f32.mrb[2].mxu0  ;;  %s4512_s1 = scalar_lea.vmem %s5864_s23, 16  ;;  %p4519_p5 = scmp.lt.s32.totalorder %s5864_s23, %s4517_s2 }
 0x110   : > { %v4841_v58 = vadd.f32 %v3625_v57, %v4830_v50  ;;  %v750_v59 = vpop.f32.mrb[3].mxu0  ;;  %v4950_v57 = vunpack.c.h.s8.bf16 %v595_v51  ;;  %v1299_v51 = vld [vmem:[%s5913_s9 + $0x20] sm:$0xff]  ;;  %p4513_p2 = scmp.ne.s32.totalorder %s5864_s23, %s4512_s1  ;;  %p4520_p6 = scmp.lt.s32.totalorder %s4518_s4, %s4512_s1 }
 0x111   : > { %v1037_v60 = vpack.c.bf16 %v820_v55, %v819_v56  ;;  %v4848_v61 = vadd.f32 %v4830_v50, %v750_v59  ;;  %v3648_v59 = vpop.f32.mrb[0].mxu1 }
 0x112   : > { %v822_v62 = vmax.f32 %v4841_v58, 0.0  ;;  %5976 = vst [vmem:[#allocation8_spill] sm:$0xff] %v4950_v57  ;;  %p4514_p3 = pnand %p4513_p2, %p4709_p10  ;;  %p4521_p7 = por %p4520_p6, %p4519_p5 }
 0x113   : > { %v821_v63 = vmax.f32 %v4848_v61, 0.0  ;;  %v3628_v0 = vpop.f32.mrb[4].mxu0  ;;  %3670 = vmatprep.subr.bf16.mxu1 %v1037_v60 }
 0x114   : > { %v4853_v1 = vadd.f32 %v3628_v0, %v4830_v50  ;;  %v760_v2 = vpop.f32.mrb[5].mxu0  ;;  %3671 = vmatpush3.bf16.msra.mxu1 %v1037_v60  ;;  %v958_v60 = vpop.f32.mrb[1].mxu1  ;;  %p4515_p4 = pneg %p4514_p3 }
 0x115   : > { %v1038_v3 = vpack.c.bf16 %v822_v62, %v821_v63  ;;  %v4860_v4 = vadd.f32 %v4830_v50, %v760_v2  ;;  %v3651_v0 = vpop.f32.mrb[2].mxu1 }
 0x116   : > { %v5932_v5 = vmax.f32 %v4853_v1, 0.0  ;;  %v968_v2 = vpop.f32.mrb[3].mxu1  ;;  %v5980_v52 = vmax.f32 %v4853_v1, 0.0  ;;  %p4522_p8 = pnand %p4521_p7, %p4515_p4 }
 0x117   : > { %v5933_v6 = vmax.f32 %v4860_v4, 0.0  ;;  %v3631_v7 = vpop.f32.mrb[6].mxu0  ;;  %3672 = vmatprep.subr.bf16.mxu1 %v1038_v3 }
 0x118   : > { %v4865_v8 = vadd.f32 %v3631_v7, %v4830_v50  ;;  %v770_v9 = vpop.f32.mrb[7].mxu0  ;;  %3673 = vmatpush3.bf16.msra.mxu1 %v1038_v3  ;;  %v4953_v3 = vpop.f32.mrb[4].mxu1 }
 0x119   : > { %v1039_v10 = vpack.c.bf16 %v5932_v5, %v5933_v6  ;;  %v4872_v11 = vadd.f32 %v4830_v50, %v770_v9  ;;  %v4955_v7 = vpop.f32.mrb[5].mxu1 }
 0x11a   : > { %v5930_v12 = vmax.f32 %v4865_v8, 0.0  ;;  %v4957_v9 = vpop.f32.mrb[6].mxu1  ;;  %v5982_v58 = vmax.f32 %v4865_v8, 0.0 }
 0x11b   : > { %v5931_v13 = vmax.f32 %v4872_v11, 0.0  ;;  %v3634_v14 = vpop.f32.mrb[8].mxu0  ;;  %3674 = vmatprep.subr.bf16.mxu1 %v1039_v10  ;;  %v5981_v61 = vmax.f32 %v4872_v11, 0.0 }
 0x11c   : > { %v4877_v15 = vadd.f32 %v3634_v14, %v4830_v50  ;;  %v780_v16 = vpop.f32.mrb[9].mxu0  ;;  %3675 = vmatpush3.bf16.msra.mxu1 %v1039_v10  ;;  %v4959_v10 = vpop.f32.mrb[7].mxu1 }
 0x11d   : > { %v1040_v17 = vpack.c.bf16 %v5930_v12, %v5931_v13  ;;  %v4884_v18 = vadd.f32 %v4830_v50, %v780_v16  ;;  %v4961_v14 = vpop.f32.mrb[8].mxu1 }
 0x11e   : > { %v5928_v19 = vmax.f32 %v4877_v15, 0.0  ;;  %v4963_v16 = vpop.f32.mrb[9].mxu1  ;;  %v5984_v1 = vmax.f32 %v4877_v15, 0.0 }
 0x11f   : > { %v5929_v20 = vmax.f32 %v4884_v18, 0.0  ;;  %v3637_v21 = vpop.f32.mrb[10].mxu0  ;;  %3676 = vmatprep.subr.bf16.mxu1 %v1040_v17 }
 0x120   : > { %v4889_v22 = vadd.f32 %v3637_v21, %v4830_v50  ;;  %v790_v23 = vpop.f32.mrb[11].mxu0  ;;  %3677 = vmatpush3.bf16.msra.mxu1 %v1040_v17 }
 0x121   : > { %v1041_v24 = vpack.c.bf16 %v5928_v19, %v5929_v20  ;;  %v4896_v25 = vadd.f32 %v4830_v50, %v790_v23  ;;  %v4965_v17 = vpop.f32.mrb[10].mxu1 }
 0x122   : > { %v5926_v26 = vmax.f32 %v4889_v22, 0.0  ;;  %v4967_v21 = vpop.f32.mrb[11].mxu1  ;;  %v5986_v8 = vmax.f32 %v4889_v22, 0.0 }
 0x123   : > { %v5927_v27 = vmax.f32 %v4896_v25, 0.0  ;;  %v3640_v28 = vpop.f32.mrb[12].mxu0  ;;  %3678 = vmatprep.subr.bf16.mxu1 %v1041_v24  ;;  %v5985_v11 = vmax.f32 %v4896_v25, 0.0 }
 0x124   : > { %v4901_v29 = vadd.f32 %v3640_v28, %v4830_v50  ;;  %v800_v30 = vpop.f32.mrb[13].mxu0  ;;  %3679 = vmatpush3.bf16.msra.mxu1 %v1041_v24 }
 0x125   : > { %v1042_v31 = vpack.c.bf16 %v5926_v26, %v5927_v27  ;;  %v4908_v32 = vadd.f32 %v4830_v50, %v800_v30  ;;  %v4969_v23 = vpop.f32.mrb[12].mxu1 }
 0x126   : > { %v5924_v33 = vmax.f32 %v4901_v29, 0.0  ;;  %v4971_v24 = vpop.f32.mrb[13].mxu1  ;;  %v5988_v15 = vmax.f32 %v4901_v29, 0.0  ;;  %v1494_v29 = vld [vmem:[%s5915_s11 + $0x78] sm:$0xff] }
 0x127   : > { %v5925_v34 = vmax.f32 %v4908_v32, 0.0  ;;  %v3643_v35 = vpop.f32.mrb[14].mxu0  ;;  %3680 = vmatprep.subr.bf16.mxu1 %v1042_v31 }
 0x128   : > { %v4913_v38 = vadd.f32 %v3643_v35, %v4830_v50  ;;  %v810_v39 = vpop.f32.mrb[15].mxu0  ;;  %3681 = vmatpush3.bf16.msra.mxu1 %v1042_v31  ;;  %v4977_v31 = vpop.trf.xlu0  ;;  %v1295_v35 = vld [vmem:[%s5913_s9] sm:$0xff] }
 0x129   : > { %v1043_v40 = vpack.c.bf16 %v5924_v33, %v5925_v34  ;;  %v4920_v41 = vadd.f32 %v4830_v50, %v810_v39  ;;  %v4939_v50 = vunpack.c.l.s8.bf16 %v594_v48  ;;  %v4973_v28 = vpop.f32.mrb[14].mxu1  ;;  %3718 = vmatprep.mubr.bf16.mxu0 %v4977_v31  ;;  %v1296_v39 = vld [vmem:[%s5913_s9 + $0x8] sm:$0xff] }
 0x12a   : > { %v5922_v42 = vmax.f32 %v4913_v38, 0.0  ;;  %v4975_v30 = vpop.f32.mrb[15].mxu1  ;;  %v5990_v22 = vmax.f32 %v4913_v38, 0.0 }
 0x12b   : > { %v5923_v43 = vmax.f32 %v4920_v41, 0.0  ;;  %3682 = vmatprep.subr.bf16.mxu1 %v1043_v40  ;;  %v5989_v25 = vmax.f32 %v4920_v41, 0.0  ;;  %v3195_v41 = vld [vmem:[%s5991_s30] ss:$0 sm:$0xff] }
 0x12c   : > { %3683 = vmatpush3.bf16.msra.mxu1 %v1043_v40  ;;  %v1297_v40 = vld [vmem:[%s5913_s9 + $0x10] sm:$0xff] }
 0x12d   : > { %v1044_v44 = vpack.c.bf16 %v5922_v42, %v5923_v43  ;;  %v4241_v48 = vpack.c.bf16 %v1298_v45, %v1297_v40  ;;  %v1300_v42 = vld [vmem:[%s5913_s9 + $0x28] sm:$0xff]  ;;  %v1303_v45 = vld [vmem:[%s5913_s9 + $0x40] sm:$0xff] }
 0x12e   : > { %v4245_v43 = vpack.c.bf16 %v1300_v42, %v1299_v51  ;;  %v1305_v51 = vld [vmem:[%s5913_s9 + $0x50] sm:$0xff] }
 0x12f   : > { %3684 = vmatprep.subr.bf16.mxu1 %v1044_v44 }
 0x130   : > { %3685 = vmatpush3.bf16.msra.mxu1 %v1044_v44  ;;  %v4237_v44 = vpack.c.bf16 %v1296_v39, %v1295_v35  ;;  %v1301_v35 = vld [vmem:[%s5913_s9 + $0x30] sm:$0xff]  ;;  %v1302_v39 = vld [vmem:[%s5913_s9 + $0x38] sm:$0xff] }
 0x131   : > { %v4249_v40 = vpack.c.bf16 %v1302_v39, %v1301_v35  ;;  %v1307_v39 = vld [vmem:[%s5913_s9 + $0x60] sm:$0xff] }
 0x132   : > { %4238 = vmatprep.subr.bf16.mxu1 %v4237_v44 }
 0x133   : > { %3687 = vmatmul.mubr.bf16.vlgmr.msra.gmra.mrb[16].mxu1 %v4930_v46 }
 0x134   : > { %3690 = vmatprep.mubr.bf16.mxu1 %v4932_v47  ;;  %4240 = vmatpush3.bf16.msra.mxu1 %v4237_v44  ;;  %v1304_v44 = vld [vmem:[%s5913_s9 + $0x48] sm:$0xff] }
 0x135   : > { %4242 = vmatprep.subr.bf16.mxu1 %v4241_v48  ;;  %v4253_v42 = vpack.c.bf16 %v1304_v44, %v1303_v45 }
 0x138   : > { %4244 = vmatpush3.bf16.msra.mxu1 %v4241_v48  ;;  %v1306_v48 = vld [vmem:[%s5913_s9 + $0x58] sm:$0xff] }
 0x139   : > { %4246 = vmatprep.subr.bf16.mxu1 %v4245_v43  ;;  %v4257_v35 = vpack.c.bf16 %v1306_v48, %v1305_v51 }
 0x13b   : > { %3691 = vmatmul.mubr.bf16.gmra.mrb[20].mxu1 %v4937_v49 }
 0x13c   : > { %3694 = vmatprep.mubr.bf16.mxu1 %v4939_v50  ;;  %4248 = vmatpush3.bf16.msra.mxu1 %v4245_v43  ;;  %v1308_v43 = vld [vmem:[%s5913_s9 + $0x68] sm:$0xff] }
 0x13d   : > { %4250 = vmatprep.subr.bf16.mxu1 %v4249_v40  ;;  %v4261_v45 = vpack.c.bf16 %v1308_v43, %v1307_v39 }
 0x140   : > { %4252 = vmatpush3.bf16.msra.mxu1 %v4249_v40  ;;  %v5025_v40 = vld [vmem:[%s5912_s8] ss:$0 sm:$0xff] }
 0x141   : > { %4254 = vmatprep.subr.bf16.mxu1 %v4253_v42  ;;  %v5028_v44 = vadd.f32 %v5025_v40, %v968_v2  ;;  %v5031_v51 = vadd.f32 %v5025_v40, %v958_v60  ;;  %v5034_v33 = vadd.f32 %v3651_v0, %v5025_v40  ;;  %v5038_v39 = vadd.f32 %v3648_v59, %v5025_v40 }
 0x142   : > { %v5045_v0 = vadd.f32 %v5025_v40, %v4959_v10  ;;  %v5049_v59 = vadd.f32 %v5025_v40, %v4955_v7 }
 0x143   : > { %3695 = vmatmul.mubr.bf16.gmra.mrb[24].mxu1 %v4944_v53  ;;  %5977 = vst [vmem:[#allocation9_spill] sm:$0xff] %v5028_v44 }
 0x144   : > { %3698 = vmatprep.mubr.bf16.mxu1 %v4946_v36  ;;  %4256 = vmatpush3.bf16.msra.mxu1 %v4253_v42  ;;  %5978 = vst [vmem:[#allocation10_spill] sm:$0xff] %v5049_v59 }
 0x145   : > { %4258 = vmatprep.subr.bf16.mxu1 %v4257_v35 }
 0x148   : > { %4260 = vmatpush3.bf16.msra.mxu1 %v4257_v35 }
 0x149   : > { %4262 = vmatprep.subr.bf16.mxu1 %v4261_v45 }
 0x14b   : > { %3699 = vmatmul.mubr.bf16.gmra.mrb[28].mxu1 %v4950_v57 }
 0x14c   : > { %4264 = vmatpush3.bf16.msra.mxu1 %v4261_v45 }
 0x206   : > { %v3688_v48 = vpop.f32.mrb[16].mxu1 }
 0x207   : > { %v1088_v42 = vadd.f32 %v3688_v48, %v5028_v44  ;;  %v1079_v35 = vpop.f32.mrb[17].mxu1 }
 0x208   : > { %v1080_v43 = vadd.f32 %v1079_v35, %v5031_v51  ;;  %v3689_v45 = vpop.f32.mrb[18].mxu1 }
 0x209   : > { %v1091_v34 = vadd.f32 %v3689_v45, %v5034_v33  ;;  %v1082_v2 = vpop.f32.mrb[19].mxu1  ;;  %v1144_v60 = vmax.f32 %v1088_v42, 0.0  ;;  %v5053_v45 = vadd.f32 %v4957_v9, %v5025_v40 }
 0x20a   : > { %v1083_v26 = vadd.f32 %v1082_v2, %v5038_v39  ;;  %v1142_v19 = vmax.f32 %v1080_v43, 0.0 }
 0x20b   : > { %v1145_v27 = vmax.f32 %v1091_v34, 0.0 }
 0x20c   : > { %v1143_v20 = vmax.f32 %v1083_v26, 0.0  ;;  %v5058_v26 = vadd.f32 %v4953_v3, %v5025_v40 }
 0x20d   : > { %v1159_v48 = vpack.c.bf16 %v1145_v27, %v1144_v60  ;;  %v5065_v60 = vadd.f32 %v5025_v40, %v4967_v21 }
 0x20e   : > { %v1158_v35 = vpack.c.bf16 %v1143_v20, %v1142_v19  ;;  %v3692_v12 = vpop.f32.mrb[20].mxu1 }
 0x20f   : > { %v1104_v42 = vadd.f32 %v3692_v12, %v5045_v0  ;;  %v1095_v34 = vpop.f32.mrb[21].mxu1 }
 0x210   : > { %v1096_v10 = vadd.f32 %v1095_v34, %v5049_v59  ;;  %v3693_v27 = vpop.f32.mrb[22].mxu1  ;;  %3702 = vmatprep.subr.bf16.mxu0 %v1158_v35  ;;  %v5069_v34 = vadd.f32 %v5025_v40, %v4963_v16 }
 0x211   : > { %v1107_v7 = vadd.f32 %v3693_v27, %v5053_v45  ;;  %v1098_v43 = vpop.f32.mrb[23].mxu1  ;;  %3703 = vmatpush3.bf16.msra.mxu0 %v1158_v35  ;;  %v1148_v20 = vmax.f32 %v1104_v42, 0.0  ;;  %v5073_v35 = vadd.f32 %v4965_v17, %v5025_v40 }
 0x212   : > { %v1099_v19 = vadd.f32 %v1098_v43, %v5058_v26  ;;  %3704 = vmatprep.subr.bf16.mxu0 %v1159_v48  ;;  %v1146_v2 = vmax.f32 %v1096_v10, 0.0 }
 0x213   : > { %v1149_v9 = vmax.f32 %v1107_v7, 0.0  ;;  %v5078_v7 = vadd.f32 %v4961_v14, %v5025_v40 }
 0x214   : > { %v1147_v12 = vmax.f32 %v1099_v19, 0.0 }
 0x215   : > { %v1161_v3 = vpack.c.bf16 %v1149_v9, %v1148_v20  ;;  %3705 = vmatpush3.bf16.msra.mxu0 %v1159_v48 }
 0x216   : > { %v1160_v27 = vpack.c.bf16 %v1147_v12, %v1146_v2  ;;  %v3696_v13 = vpop.f32.mrb[24].mxu1  ;;  %v5085_v2 = vadd.f32 %v5025_v40, %v4975_v30  ;;  %v5089_v12 = vadd.f32 %v5025_v40, %v4971_v24 }
 0x217   : > { %v1120_v42 = vadd.f32 %v3696_v13, %v5065_v60  ;;  %v1111_v10 = vpop.f32.mrb[25].mxu1 }
 0x218   : > { %v1112_v21 = vadd.f32 %v1111_v10, %v5069_v34  ;;  %v3697_v48 = vpop.f32.mrb[26].mxu1  ;;  %3706 = vmatprep.subr.bf16.mxu0 %v1160_v27 }
 0x219   : > { %v1123_v16 = vadd.f32 %v3697_v48, %v5073_v35  ;;  %v1114_v43 = vpop.f32.mrb[27].mxu1  ;;  %3707 = vmatpush3.bf16.msra.mxu0 %v1160_v27  ;;  %v1152_v17 = vmax.f32 %v1120_v42, 0.0  ;;  %v5093_v27 = vadd.f32 %v4973_v28, %v5025_v40 }
 0x21a   : > { %v1115_v19 = vadd.f32 %v1114_v43, %v5078_v7  ;;  %3708 = vmatprep.subr.bf16.mxu0 %v1161_v3  ;;  %v1150_v9 = vmax.f32 %v1112_v21, 0.0  ;;  %v5101_v43 = vpop.trf.xlu0 }
 0x21b   : > { %v1153_v20 = vmax.f32 %v1123_v16, 0.0  ;;  %v5098_v16 = vadd.f32 %v4969_v23, %v5025_v40 }
 0x21c   : > { %v1151_v13 = vmax.f32 %v1115_v19, 0.0 }
 0x21d   : > { %v1163_v14 = vpack.c.bf16 %v1153_v20, %v1152_v17  ;;  %3709 = vmatpush3.bf16.msra.mxu0 %v1161_v3 }
 0x21e   : > { %v1162_v10 = vpack.c.bf16 %v1151_v13, %v1150_v9  ;;  %v3700_v48 = vpop.f32.mrb[28].mxu1  ;;  %v5105_v40 = vpop.trf.xlu0 }
 0x21f   : > { %v1136_v42 = vadd.f32 %v3700_v48, %v5085_v2  ;;  %v1127_v21 = vpop.f32.mrb[29].mxu1 }
 0x220   : > { %v1128_v30 = vadd.f32 %v1127_v21, %v5089_v12  ;;  %v3701_v3 = vpop.f32.mrb[30].mxu1  ;;  %3710 = vmatprep.subr.bf16.mxu0 %v1162_v10 }
 0x221   : > { %v1139_v24 = vadd.f32 %v3701_v3, %v5093_v27  ;;  %v1130_v19 = vpop.f32.mrb[31].mxu1  ;;  %3711 = vmatpush3.bf16.msra.mxu0 %v1162_v10  ;;  %v1156_v17 = vmax.f32 %v1136_v42, 0.0  ;;  %v1309_v3 = vld [vmem:[%s5913_s9 + $0x70] sm:$0xff] }
 0x222   : > { %v1131_v28 = vadd.f32 %v1130_v19, %v5098_v16  ;;  %3712 = vmatprep.subr.bf16.mxu0 %v1163_v14  ;;  %v1154_v9 = vmax.f32 %v1128_v30, 0.0  ;;  %v5107_v21 = vpop.trf.xlu0 }
 0x223   : > { %v1157_v20 = vmax.f32 %v1139_v24, 0.0  ;;  %v1310_v24 = vld [vmem:[%s5913_s9 + $0x78] sm:$0xff] }
 0x224   : > { %v1155_v13 = vmax.f32 %v1131_v28, 0.0  ;;  %v4265_v19 = vpack.c.bf16 %v1310_v24, %v1309_v3  ;;  %v1479_v28 = vld [vmem:[%s5915_s11] sm:$0xff]  ;;  %v1484_v3 = vld [vmem:[%s5915_s11 + $0x28] sm:$0xff] }
 0x225   : > { %v1165_v48 = vpack.c.bf16 %v1157_v20, %v1156_v17  ;;  %3713 = vmatpush3.bf16.msra.mxu0 %v1163_v14  ;;  %v1480_v17 = vld [vmem:[%s5915_s11 + $0x8] sm:$0xff]  ;;  %v1481_v20 = vld [vmem:[%s5915_s11 + $0x10] sm:$0xff] }
 0x226   : > { %v1164_v23 = vpack.c.bf16 %v1155_v13, %v1154_v9  ;;  %v5111_v10 = vpop.trf.xlu0  ;;  %4266 = vmatprep.subr.bf16.mxu1 %v4265_v19  ;;  %v4269_v9 = vpack.c.bf16 %v1480_v17, %v1479_v28  ;;  %v1482_v13 = vld [vmem:[%s5915_s11 + $0x18] sm:$0xff] }
 0x227   : > { %4268 = vmatpush3.bf16.msra.mxu1 %v4265_v19  ;;  %v1485_v19 = vld [vmem:[%s5915_s11 + $0x30] sm:$0xff]  ;;  %v1486_v28 = vld [vmem:[%s5915_s11 + $0x38] sm:$0xff] }
 0x228   : > { %3714 = vmatprep.subr.bf16.mxu0 %v1164_v23  ;;  %v4281_v17 = vpack.c.bf16 %v1486_v28, %v1485_v19  ;;  %v1491_v19 = vld [vmem:[%s5915_s11 + $0x60] sm:$0xff] }
 0x229   : > { %3715 = vmatpush3.bf16.msra.mxu0 %v1164_v23  ;;  %v1483_v23 = vld [vmem:[%s5915_s11 + $0x20] sm:$0xff] }
 0x22a   : > { %3716 = vmatprep.subr.bf16.mxu0 %v1165_v48  ;;  %v5114_v42 = vpop.trf.xlu0  ;;  %v4277_v24 = vpack.c.bf16 %v1484_v3, %v1483_v23  ;;  %v1489_v23 = vld [vmem:[%s5915_s11 + $0x50] sm:$0xff] }
 0x22d   : > { %3717 = vmatpush3.bf16.msra.mxu0 %v1165_v48  ;;  %v4273_v48 = vpack.c.bf16 %v1482_v13, %v1481_v20  ;;  %v1487_v20 = vld [vmem:[%s5915_s11 + $0x40] sm:$0xff] }
 0x22e   : > { %v5117_v14 = vpop.trf.xlu0  ;;  %4270 = vmatprep.subr.bf16.mxu0 %v4269_v9 }
 0x230   : > { %3719 = vmatmul.mubr.bf16.vlgmr.msra.gmra.mrb[16].mxu0 %v5101_v43 }
 0x231   : > { %3722 = vmatprep.mubr.bf16.mxu0 %v5105_v40  ;;  %4272 = vmatpush3.bf16.msra.mxu0 %v4269_v9  ;;  %v1488_v9 = vld [vmem:[%s5915_s11 + $0x48] sm:$0xff] }
 0x232   : > { %v5121_v30 = vpop.trf.xlu0  ;;  %4274 = vmatprep.subr.bf16.mxu0 %v4273_v48  ;;  %v4285_v13 = vpack.c.bf16 %v1488_v9, %v1487_v20 }
 0x235   : > { %4276 = vmatpush3.bf16.msra.mxu0 %v4273_v48  ;;  %v1490_v48 = vld [vmem:[%s5915_s11 + $0x58] sm:$0xff] }
 0x236   : > { %4278 = vmatprep.subr.bf16.mxu0 %v4277_v24  ;;  %v4289_v3 = vpack.c.bf16 %v1490_v48, %v1489_v23 }
 0x238   : > { %3723 = vmatmul.mubr.bf16.gmra.mrb[20].mxu0 %v5107_v21 }
 0x239   : > { %3726 = vmatprep.mubr.bf16.mxu0 %v5111_v10  ;;  %4280 = vmatpush3.bf16.msra.mxu0 %v4277_v24  ;;  %v1492_v24 = vld [vmem:[%s5915_s11 + $0x68] sm:$0xff] }
 0x23a   : > { %4282 = vmatprep.subr.bf16.mxu0 %v4281_v17  ;;  %v4293_v28 = vpack.c.bf16 %v1492_v24, %v1491_v19  ;;  %v5979_v24 = vmax.f32 %v4860_v4, 0.0  ;;  %v5983_v4 = vmax.f32 %v4884_v18, 0.0  ;;  %v5987_v18 = vmax.f32 %v4908_v32, 0.0  ;;  %v1493_v32 = vld [vmem:[%s5915_s11 + $0x70] sm:$0xff] }
 0x23d   : > { %4284 = vmatpush3.bf16.msra.mxu0 %v4281_v17 }
 0x23e   : > { %4286 = vmatprep.subr.bf16.mxu0 %v4285_v13 }
 0x240   : > { %3727 = vmatmul.mubr.bf16.gmra.mrb[24].mxu0 %v5114_v42 }
 0x241   : > { %3730 = vmatprep.mubr.bf16.mxu0 %v5117_v14  ;;  %4288 = vmatpush3.bf16.msra.mxu0 %v4285_v13 }
 0x242   : > { %4290 = vmatprep.subr.bf16.mxu0 %v4289_v3 }
 0x245   : > { %4292 = vmatpush3.bf16.msra.mxu0 %v4289_v3 }
 0x246   : > { %4294 = vmatprep.subr.bf16.mxu0 %v4293_v28 }
 0x248   : > { %3731 = vmatmul.mubr.bf16.gmra.mrb[28].mxu0 %v5121_v30 }
 0x249   : > { %4296 = vmatpush3.bf16.msra.mxu0 %v4293_v28 }
 0x303   : > { %v3720_v20 = vpop.f32.mrb[16].mxu0 }
 0x304   : > { %v1216_v9 = vpop.f32.mrb[17].mxu0  ;;  %v1281_v6 = vadd.f32 %v3720_v20, %v821_v63 }
 0x305   : > { %v1279_v17 = vadd.f32 %v1216_v9, %v819_v56  ;;  %v3721_v23 = vpop.f32.mrb[18].mxu0 }
 0x306   : > { %v1219_v48 = vpop.f32.mrb[19].mxu0  ;;  %v1282_v13 = vadd.f32 %v3721_v23, %v822_v62 }
 0x307   : > { %v1280_v5 = vadd.f32 %v1219_v48, %v820_v55  ;;  %3766 = vmatprep.mubr.f32.mxu1 %v1279_v17 }
 0x309   : > { %3767 = vmatmul.mubr.f32.vlgmr.msra.gmra.mrb[32].mxu1 %v1280_v5 }
 0x30a   : > { %3769 = vmatprep.mubr.f32.mxu1 %v1281_v6 }
 0x30b   : > { %v3724_v3 = vpop.f32.mrb[20].mxu0 }
 0x30c   : > { %v1232_v19 = vpop.f32.mrb[21].mxu0  ;;  %v1285_v63 = vadd.f32 %v3724_v3, %v5981_v61  ;;  %v4297_v61 = vpack.c.bf16 %v1494_v29, %v1493_v32 }
 0x30d   : > { %v1283_v54 = vadd.f32 %v1232_v19, %v5979_v24  ;;  %v3725_v56 = vpop.f32.mrb[22].mxu0  ;;  %3770 = vmatmul.mubr.f32.gmra.mrb[34].mxu1 %v1282_v13 }
 0x30e   : > { %v1235_v28 = vpop.f32.mrb[23].mxu0  ;;  %v1286_v62 = vadd.f32 %v3725_v56, %v5982_v58  ;;  %4298 = vmatprep.subr.bf16.mxu0 %v4297_v61 }
 0x30f   : > { %v1284_v55 = vadd.f32 %v1235_v28, %v5980_v52  ;;  %3772 = vmatprep.mubr.f32.mxu1 %v1283_v54  ;;  %4300 = vmatpush3.bf16.msra.mxu0 %v4297_v61 }
 0x311   : > { %3773 = vmatmul.mubr.f32.gmra.mrb[36].mxu1 %v1284_v55 }
 0x312   : > { %3775 = vmatprep.mubr.f32.mxu1 %v1285_v63 }
 0x313   : > { %v3728_v5 = vpop.f32.mrb[24].mxu0 }
 0x314   : > { %v1248_v6 = vpop.f32.mrb[25].mxu0  ;;  %v1289_v48 = vadd.f32 %v3728_v5, %v5985_v11 }
 0x315   : > { %v1287_v20 = vadd.f32 %v1248_v6, %v5983_v4  ;;  %v3729_v9 = vpop.f32.mrb[26].mxu0  ;;  %3776 = vmatmul.mubr.f32.gmra.mrb[38].mxu1 %v1286_v62 }
 0x316   : > { %v1251_v17 = vpop.f32.mrb[27].mxu0  ;;  %v1290_v13 = vadd.f32 %v3729_v9, %v5986_v8 }
 0x317   : > { %v1288_v23 = vadd.f32 %v1251_v17, %v5984_v1  ;;  %3778 = vmatprep.mubr.f32.mxu1 %v1287_v20 }
 0x319   : > { %3779 = vmatmul.mubr.f32.gmra.mrb[40].mxu1 %v1288_v23 }
 0x31a   : > { %3781 = vmatprep.mubr.f32.mxu1 %v1289_v48 }
 0x31b   : > { %v3732_v3 = vpop.f32.mrb[28].mxu0 }
 0x31c   : > { %v1264_v19 = vpop.f32.mrb[29].mxu0  ;;  %v1293_v52 = vadd.f32 %v3732_v3, %v5989_v25 }
 0x31d   : > { %v1291_v24 = vadd.f32 %v1264_v19, %v5987_v18  ;;  %v3733_v54 = vpop.f32.mrb[30].mxu0  ;;  %3782 = vmatmul.mubr.f32.gmra.mrb[42].mxu1 %v1290_v13 }
 0x31e   : > { %v1267_v56 = vpop.f32.mrb[31].mxu0  ;;  %v1294_v55 = vadd.f32 %v3733_v54, %v5990_v22 }
 0x31f   : > { %v1292_v28 = vadd.f32 %v1267_v56, %v5988_v15  ;;  %3784 = vmatprep.mubr.f32.mxu1 %v1291_v24 }
 0x321   : > { %3785 = vmatmul.mubr.f32.gmra.mrb[44].mxu1 %v1292_v28 }
 0x322   : > { %3787 = vmatprep.mubr.f32.mxu1 %v1293_v52 }
 0x325   : > { %3788 = vmatmul.mubr.f32.gmra.mrb[46].mxu1 %v1294_v55 }
 0x326   : > { %3862 = vmatprep.mubr.bf16.mxu1 %v4821_v37 }
 0x3dc   : > { %v3768_v38 = vpop.f32.mrb[32].mxu1 }
 0x3dd   : > { %v1390_v63 = vadd.f32 %v3768_v38, %v3195_v41  ;;  %v1384_v58 = vpop.f32.mrb[33].mxu1 }
 0x3de   : > { %v1385_v62 = vadd.f32 %v3195_v41, %v1384_v58 }
 0x3df   : > { %v1464_v4 = vmax.f32 %v1390_v63, 0.0 }
 0x3e0   : > { %v1463_v5 = vmax.f32 %v1385_v62, 0.0  ;;  %v3771_v6 = vpop.f32.mrb[34].mxu1 }
 0x3e1   : > { %v1400_v20 = vadd.f32 %v3771_v6, %v3195_v41  ;;  %v1394_v9 = vpop.f32.mrb[35].mxu1 }
 0x3e2   : > { %v1395_v17 = vadd.f32 %v3195_v41, %v1394_v9  ;;  %3822 = vmatprep.mubr.f32.mxu0 %v1463_v5 }
 0x3e3   : > { %3823 = vmatmul.mubr.f32.vlgmr.msra.gmra.mrb[32].mxu0 %v1464_v4  ;;  %v1466_v11 = vmax.f32 %v1400_v20, 0.0 }
 0x3e4   : > { %v1465_v1 = vmax.f32 %v1395_v17, 0.0  ;;  %v3774_v23 = vpop.f32.mrb[36].mxu1 }
 0x3e5   : > { %v1410_v48 = vadd.f32 %v3774_v23, %v3195_v41  ;;  %v1404_v8 = vpop.f32.mrb[37].mxu1 }
 0x3e6   : > { %v1405_v13 = vadd.f32 %v3195_v41, %v1404_v8  ;;  %3825 = vmatprep.mubr.f32.mxu0 %v1465_v1 }
 0x3e7   : > { %3826 = vmatmul.mubr.f32.gmra.mrb[34].mxu0 %v1466_v11  ;;  %v1468_v18 = vmax.f32 %v1410_v48, 0.0 }
 0x3e8   : > { %v1467_v3 = vmax.f32 %v1405_v13, 0.0  ;;  %v3777_v19 = vpop.f32.mrb[38].mxu1 }
 0x3e9   : > { %v1420_v24 = vadd.f32 %v3777_v19, %v3195_v41  ;;  %v1414_v54 = vpop.f32.mrb[39].mxu1  ;;  %v5218_v19 = vld [vmem:[%s5916_s12] ss:$0 sm:$0xff] }
 0x3ea   : > { %v1415_v56 = vadd.f32 %v3195_v41, %v1414_v54  ;;  %3828 = vmatprep.mubr.f32.mxu0 %v1467_v3 }
 0x3eb   : > { %3829 = vmatmul.mubr.f32.gmra.mrb[36].mxu0 %v1468_v18  ;;  %v1470_v25 = vmax.f32 %v1420_v24, 0.0 }
 0x3ec   : > { %v1469_v15 = vmax.f32 %v1415_v56, 0.0  ;;  %v3780_v28 = vpop.f32.mrb[40].mxu1 }
 0x3ed   : > { %v1430_v52 = vadd.f32 %v3780_v28, %v3195_v41  ;;  %v1424_v22 = vpop.f32.mrb[41].mxu1 }
 0x3ee   : > { %v1425_v55 = vadd.f32 %v3195_v41, %v1424_v22  ;;  %3831 = vmatprep.mubr.f32.mxu0 %v1469_v15 }
 0x3ef   : > { %3832 = vmatmul.mubr.f32.gmra.mrb[38].mxu0 %v1470_v25  ;;  %v1472_v61 = vmax.f32 %v1430_v52, 0.0 }
 0x3f0   : > { %v1471_v32 = vmax.f32 %v1425_v55, 0.0  ;;  %v3783_v29 = vpop.f32.mrb[42].mxu1 }
 0x3f1   : > { %v1440_v38 = vadd.f32 %v3783_v29, %v3195_v41  ;;  %v1434_v63 = vpop.f32.mrb[43].mxu1 }
 0x3f2   : > { %v1435_v58 = vadd.f32 %v3195_v41, %v1434_v63  ;;  %3834 = vmatprep.mubr.f32.mxu0 %v1471_v32 }
 0x3f3   : > { %3835 = vmatmul.mubr.f32.gmra.mrb[40].mxu0 %v1472_v61  ;;  %v1474_v6 = vmax.f32 %v1440_v38, 0.0 }
 0x3f4   : > { %v1473_v62 = vmax.f32 %v1435_v58, 0.0  ;;  %v3786_v5 = vpop.f32.mrb[44].mxu1 }
 0x3f5   : > { %v1450_v4 = vadd.f32 %v3786_v5, %v3195_v41  ;;  %v1444_v20 = vpop.f32.mrb[45].mxu1 }
 0x3f6   : > { %v1445_v9 = vadd.f32 %v3195_v41, %v1444_v20  ;;  %3837 = vmatprep.mubr.f32.mxu0 %v1473_v62 }
 0x3f7   : > { %3838 = vmatmul.mubr.f32.gmra.mrb[42].mxu0 %v1474_v6  ;;  %v1476_v23 = vmax.f32 %v1450_v4, 0.0 }
 0x3f8   : > { %v1475_v17 = vmax.f32 %v1445_v9, 0.0  ;;  %v3789_v1 = vpop.f32.mrb[46].mxu1 }
 0x3f9   : > { %v1460_v11 = vadd.f32 %v3789_v1, %v3195_v41  ;;  %v1454_v48 = vpop.f32.mrb[47].mxu1 }
 0x3fa   : > { %v1455_v8 = vadd.f32 %v3195_v41, %v1454_v48  ;;  %3840 = vmatprep.mubr.f32.mxu0 %v1475_v17 }
 0x3fb   : > { %3841 = vmatmul.mubr.f32.gmra.mrb[44].mxu0 %v1476_v23  ;;  %v1478_v3 = vmax.f32 %v1460_v11, 0.0 }
 0x3fc   : > { %v1477_v13 = vmax.f32 %v1455_v8, 0.0 }
 0x3fe   : > { %3843 = vmatprep.mubr.f32.mxu0 %v1477_v13 }
 0x3ff   : > { %3844 = vmatmul.mubr.f32.gmra.mrb[46].mxu0 %v1478_v3 }
 0x400   : > { %3894 = vmatprep.mubr.bf16.mxu0 %v4977_v31 }
 0x4b6   : > { %v3824_v18 = vpop.f32.mrb[32].mxu0 }
 0x4b7   : > { %v5221_v24 = vadd.f32 %v3824_v18, %v5218_v19  ;;  %v1568_v54 = vpop.f32.mrb[33].mxu0 }
 0x4b8   : > { %v5224_v41 = vadd.f32 %v5218_v19, %v1568_v54 }
 0x4b9   : > { %v5948_v56 = vmax.f32 %v5221_v24, 0.0 }
 0x4ba   : > { %v5949_v15 = vmax.f32 %v5224_v41, 0.0  ;;  %v3827_v28 = vpop.f32.mrb[34].mxu0 }
 0x4bb   : > { %v5229_v25 = vadd.f32 %v3827_v28, %v5218_v19  ;;  %v1578_v52 = vpop.f32.mrb[35].mxu0 }
 0x4bc   : > { %v1663_v22 = vpack.c.bf16 %v5948_v56, %v5949_v15  ;;  %v5236_v55 = vadd.f32 %v5218_v19, %v1578_v52 }
 0x4bd   : > { %v5946_v32 = vmax.f32 %v5229_v25, 0.0 }
 0x4be   : > { %v5947_v29 = vmax.f32 %v5236_v55, 0.0  ;;  %v3830_v61 = vpop.f32.mrb[36].mxu0  ;;  %3846 = vmatprep.subr.bf16.mxu1 %v1663_v22 }
 0x4bf   : > { %v5241_v38 = vadd.f32 %v3830_v61, %v5218_v19  ;;  %v1588_v63 = vpop.f32.mrb[37].mxu0  ;;  %3847 = vmatpush3.bf16.msra.mxu1 %v1663_v22 }
 0x4c0   : > { %v1664_v58 = vpack.c.bf16 %v5946_v32, %v5947_v29  ;;  %v5248_v62 = vadd.f32 %v5218_v19, %v1588_v63 }
 0x4c1   : > { %v5944_v5 = vmax.f32 %v5241_v38, 0.0 }
 0x4c2   : > { %v5945_v6 = vmax.f32 %v5248_v62, 0.0  ;;  %v3833_v4 = vpop.f32.mrb[38].mxu0  ;;  %3848 = vmatprep.subr.bf16.mxu1 %v1664_v58 }
 0x4c3   : > { %v5253_v20 = vadd.f32 %v3833_v4, %v5218_v19  ;;  %v1598_v9 = vpop.f32.mrb[39].mxu0  ;;  %3849 = vmatpush3.bf16.msra.mxu1 %v1664_v58 }
 0x4c4   : > { %v1665_v17 = vpack.c.bf16 %v5944_v5, %v5945_v6  ;;  %v5260_v1 = vadd.f32 %v5218_v19, %v1598_v9 }
 0x4c5   : > { %v5936_v23 = vmax.f32 %v5253_v20, 0.0 }
 0x4c6   : > { %v5943_v11 = vmax.f32 %v5260_v1, 0.0  ;;  %v3836_v48 = vpop.f32.mrb[40].mxu0  ;;  %3850 = vmatprep.subr.bf16.mxu1 %v1665_v17 }
 0x4c7   : > { %v5265_v8 = vadd.f32 %v3836_v48, %v5218_v19  ;;  %v1608_v13 = vpop.f32.mrb[41].mxu0  ;;  %3851 = vmatpush3.bf16.msra.mxu1 %v1665_v17 }
 0x4c8   : > { %v1666_v3 = vpack.c.bf16 %v5936_v23, %v5943_v11  ;;  %v5272_v18 = vadd.f32 %v5218_v19, %v1608_v13 }
 0x4c9   : > { %v5934_v54 = vmax.f32 %v5265_v8, 0.0 }
 0x4ca   : > { %v5935_v28 = vmax.f32 %v5272_v18, 0.0  ;;  %v3839_v52 = vpop.f32.mrb[42].mxu0  ;;  %3852 = vmatprep.subr.bf16.mxu1 %v1666_v3 }
 0x4cb   : > { %v5277_v22 = vadd.f32 %v3839_v52, %v5218_v19  ;;  %v1618_v61 = vpop.f32.mrb[43].mxu0  ;;  %3853 = vmatpush3.bf16.msra.mxu1 %v1666_v3 }
 0x4cc   : > { %v1667_v63 = vpack.c.bf16 %v5934_v54, %v5935_v28  ;;  %v5284_v58 = vadd.f32 %v5218_v19, %v1618_v61 }
 0x4cd   : > { %v5937_v4 = vmax.f32 %v5277_v22, 0.0 }
 0x4ce   : > { %v5938_v9 = vmax.f32 %v5284_v58, 0.0  ;;  %v3842_v17 = vpop.f32.mrb[44].mxu0  ;;  %3854 = vmatprep.subr.bf16.mxu1 %v1667_v63 }
 0x4cf   : > { %v5289_v48 = vadd.f32 %v3842_v17, %v5218_v19  ;;  %v1628_v13 = vpop.f32.mrb[45].mxu0  ;;  %3855 = vmatpush3.bf16.msra.mxu1 %v1667_v63 }
 0x4d0   : > { %v1668_v3 = vpack.c.bf16 %v5937_v4, %v5938_v9  ;;  %v5296_v52 = vadd.f32 %v5218_v19, %v1628_v13 }
 0x4d1   : > { %v5941_v61 = vmax.f32 %v5289_v48, 0.0 }
 0x4d2   : > { %v5942_v54 = vmax.f32 %v5296_v52, 0.0  ;;  %v3845_v28 = vpop.f32.mrb[46].mxu0  ;;  %3856 = vmatprep.subr.bf16.mxu1 %v1668_v3 }
 0x4d3   : > { %v5301_v23 = vadd.f32 %v3845_v28, %v5218_v19  ;;  %v1638_v17 = vpop.f32.mrb[47].mxu0  ;;  %3857 = vmatpush3.bf16.msra.mxu1 %v1668_v3  ;;  %v3198_v3 = vld [vmem:[%s5913_s9 + $0x88] sm:$0xff] }
 0x4d4   : > { %v1669_v63 = vpack.c.bf16 %v5941_v61, %v5942_v54  ;;  %v5308_v4 = vadd.f32 %v5218_v19, %v1638_v17  ;;  %v3197_v19 = vld [vmem:[%s5913_s9 + $0x80] sm:$0xff]  ;;  %v3199_v17 = vld [vmem:[%s5913_s9 + $0x90] sm:$0xff]  ;;  %v3202_v61 = vld [vmem:[%s5913_s9 + $0xa8] sm:$0xff] }
 0x4d5   : > { %v5939_v13 = vmax.f32 %v5301_v23, 0.0 }
 0x4d6   : > { %v5940_v9 = vmax.f32 %v5308_v4, 0.0  ;;  %3858 = vmatprep.subr.bf16.mxu1 %v1669_v63 }
 0x4d7   : > { %3859 = vmatpush3.bf16.msra.mxu1 %v1669_v63  ;;  %v4301_v63 = vpack.c.bf16 %v3198_v3, %v3197_v19  ;;  %v3203_v19 = vld [vmem:[%s5913_s9 + $0xb0] sm:$0xff]  ;;  %v3204_v3 = vld [vmem:[%s5913_s9 + $0xb8] sm:$0xff] }
 0x4d8   : > { %v1670_v28 = vpack.c.bf16 %v5939_v13, %v5940_v9  ;;  %v3201_v9 = vld [vmem:[%s5913_s9 + $0xa0] sm:$0xff] }
 0x4d9   : > { %v4309_v54 = vpack.c.bf16 %v3202_v61, %v3201_v9  ;;  %v3207_v61 = vld [vmem:[%s5913_s9 + $0xd0] sm:$0xff] }
 0x4da   : > { %3860 = vmatprep.subr.bf16.mxu1 %v1670_v28 }
 0x4db   : > { %3861 = vmatpush3.bf16.msra.mxu1 %v1670_v28  ;;  %v3200_v28 = vld [vmem:[%s5913_s9 + $0x98] sm:$0xff] }
 0x4dc   : > { %v4305_v13 = vpack.c.bf16 %v3200_v28, %v3199_v17  ;;  %4302 = vmatprep.subr.bf16.mxu1 %v4301_v63  ;;  %v4313_v17 = vpack.c.bf16 %v3204_v3, %v3203_v19  ;;  %v3205_v28 = vld [vmem:[%s5913_s9 + $0xc0] sm:$0xff] }
 0x4dd   : > { %v3209_v3 = vld [vmem:[%s5913_s9 + $0xe0] sm:$0xff] }
 0x4de   : > { %3863 = vmatmul.mubr.bf16.vlgmr.msra.gmra.mrb[48].mxu1 %v4930_v46 }
 0x4df   : > { %3866 = vmatprep.mubr.bf16.mxu1 %v4932_v47  ;;  %4304 = vmatpush3.bf16.msra.mxu1 %v4301_v63  ;;  %v3206_v63 = vld [vmem:[%s5913_s9 + $0xc8] sm:$0xff] }
 0x4e0   : > { %4306 = vmatprep.subr.bf16.mxu1 %v4305_v13  ;;  %v4317_v9 = vpack.c.bf16 %v3206_v63, %v3205_v28 }
 0x4e3   : > { %4308 = vmatpush3.bf16.msra.mxu1 %v4305_v13  ;;  %v3208_v13 = vld [vmem:[%s5913_s9 + $0xd8] sm:$0xff] }
 0x4e4   : > { %4310 = vmatprep.subr.bf16.mxu1 %v4309_v54  ;;  %v4321_v19 = vpack.c.bf16 %v3208_v13, %v3207_v61 }
 0x4e6   : > { %3867 = vmatmul.mubr.bf16.gmra.mrb[52].mxu1 %v4937_v49 }
 0x4e7   : > { %3870 = vmatprep.mubr.bf16.mxu1 %v4939_v50  ;;  %4312 = vmatpush3.bf16.msra.mxu1 %v4309_v54  ;;  %v3210_v54 = vld [vmem:[%s5913_s9 + $0xe8] sm:$0xff] }
 0x4e8   : > { %4314 = vmatprep.subr.bf16.mxu1 %v4313_v17  ;;  %v4325_v28 = vpack.c.bf16 %v3210_v54, %v3209_v3 }
 0x4eb   : > { %4316 = vmatpush3.bf16.msra.mxu1 %v4313_v17 }
 0x4ec   : > { %4318 = vmatprep.subr.bf16.mxu1 %v4317_v9 }
 0x4ee   : > { %3871 = vmatmul.mubr.bf16.gmra.mrb[56].mxu1 %v4944_v53 }
 0x4ef   : > { %3874 = vmatprep.mubr.bf16.mxu1 %v4946_v36  ;;  %4320 = vmatpush3.bf16.msra.mxu1 %v4317_v9 }
 0x4f0   : > { %4322 = vmatprep.subr.bf16.mxu1 %v4321_v19 }
 0x4f3   : > { %4324 = vmatpush3.bf16.msra.mxu1 %v4321_v19 }
 0x4f4   : > { %4326 = vmatprep.subr.bf16.mxu1 %v4325_v28 }
 0x4f6   : > { %3875 = vmatmul.mubr.bf16.gmra.mrb[60].mxu1 %v4950_v57 }
 0x4f7   : > { %4328 = vmatpush3.bf16.msra.mxu1 %v4325_v28 }
 0x5b1   : > { %v3864_v63 = vpop.f32.mrb[48].mxu1 }
 0x5b2   : > { %v1714_v11 = vadd.f32 %v3864_v63, %v5028_v44  ;;  %v1705_v17 = vpop.f32.mrb[49].mxu1 }
 0x5b3   : > { %v1706_v61 = vadd.f32 %v1705_v17, %v5031_v51  ;;  %v3865_v13 = vpop.f32.mrb[50].mxu1 }
 0x5b4   : > { %v1717_v5 = vadd.f32 %v3865_v13, %v5034_v33  ;;  %v1708_v6 = vpop.f32.mrb[51].mxu1  ;;  %v1770_v29 = vmax.f32 %v1714_v11, 0.0 }
 0x5b5   : > { %v1709_v32 = vadd.f32 %v1708_v6, %v5038_v39  ;;  %v1768_v9 = vmax.f32 %v1706_v61, 0.0 }
 0x5b6   : > { %v1771_v56 = vmax.f32 %v1717_v5, 0.0 }
 0x5b7   : > { %v1769_v15 = vmax.f32 %v1709_v32, 0.0 }
 0x5b8   : > { %v1785_v3 = vpack.c.bf16 %v1771_v56, %v1770_v29 }
 0x5b9   : > { %v1784_v19 = vpack.c.bf16 %v1769_v15, %v1768_v9  ;;  %v3868_v54 = vpop.f32.mrb[52].mxu1 }
 0x5ba   : > { %v1730_v28 = vadd.f32 %v3868_v54, %v5045_v0  ;;  %v1721_v57 = vpop.f32.mrb[53].mxu1 }
 0x5bb   : > { %v1722_v63 = vadd.f32 %v1721_v57, %v5049_v59  ;;  %v3869_v44 = vpop.f32.mrb[54].mxu1  ;;  %3878 = vmatprep.subr.bf16.mxu0 %v1784_v19 }
 0x5bc   : > { %v1733_v17 = vadd.f32 %v3869_v44, %v5053_v45  ;;  %v1724_v13 = vpop.f32.mrb[55].mxu1  ;;  %3879 = vmatpush3.bf16.msra.mxu0 %v1784_v19  ;;  %v1774_v5 = vmax.f32 %v1730_v28, 0.0 }
 0x5bd   : > { %v1725_v6 = vadd.f32 %v1724_v13, %v5058_v26  ;;  %3880 = vmatprep.subr.bf16.mxu0 %v1785_v3  ;;  %v1772_v32 = vmax.f32 %v1722_v63, 0.0 }
 0x5be   : > { %v1775_v11 = vmax.f32 %v1733_v17, 0.0 }
 0x5bf   : > { %v1773_v56 = vmax.f32 %v1725_v6, 0.0 }
 0x5c0   : > { %v1787_v15 = vpack.c.bf16 %v1775_v11, %v1774_v5  ;;  %3881 = vmatpush3.bf16.msra.mxu0 %v1785_v3 }
 0x5c1   : > { %v1786_v29 = vpack.c.bf16 %v1773_v56, %v1772_v32  ;;  %v3872_v61 = vpop.f32.mrb[56].mxu1 }
 0x5c2   : > { %v1746_v9 = vadd.f32 %v3872_v61, %v5065_v60  ;;  %v1737_v57 = vpop.f32.mrb[57].mxu1 }
 0x5c3   : > { %v1738_v54 = vadd.f32 %v1737_v57, %v5069_v34  ;;  %v3873_v59 = vpop.f32.mrb[58].mxu1  ;;  %3882 = vmatprep.subr.bf16.mxu0 %v1786_v29 }
 0x5c4   : > { %v1749_v44 = vadd.f32 %v3873_v59, %v5073_v35  ;;  %v1740_v19 = vpop.f32.mrb[59].mxu1  ;;  %3883 = vmatpush3.bf16.msra.mxu0 %v1786_v29  ;;  %v1778_v63 = vmax.f32 %v1746_v9, 0.0 }
 0x5c5   : > { %v1741_v28 = vadd.f32 %v1740_v19, %v5078_v7  ;;  %3884 = vmatprep.subr.bf16.mxu0 %v1787_v15  ;;  %v1776_v13 = vmax.f32 %v1738_v54, 0.0 }
 0x5c6   : > { %v1779_v17 = vmax.f32 %v1749_v44, 0.0 }
 0x5c7   : > { %v1777_v3 = vmax.f32 %v1741_v28, 0.0 }
 0x5c8   : > { %v1789_v6 = vpack.c.bf16 %v1779_v17, %v1778_v63  ;;  %3885 = vmatpush3.bf16.msra.mxu0 %v1787_v15  ;;  %v3211_v17 = vld [vmem:[%s5913_s9 + $0xf0] sm:$0xff] }
 0x5c9   : > { %v1788_v5 = vpack.c.bf16 %v1777_v3, %v1776_v13  ;;  %v3876_v11 = vpop.f32.mrb[60].mxu1  ;;  %v3212_v13 = vld [vmem:[%s5913_s9 + $0xf8] sm:$0xff] }
 0x5ca   : > { %v1762_v32 = vadd.f32 %v3876_v11, %v5085_v2  ;;  %v1753_v56 = vpop.f32.mrb[61].mxu1  ;;  %v4329_v3 = vpack.c.bf16 %v3212_v13, %v3211_v17  ;;  %v3217_v11 = vld [vmem:[%s5915_s11 + $0x90] sm:$0xff]  ;;  %v3226_v17 = vld [vmem:[%s5915_s11 + $0xd8] sm:$0xff] }
 0x5cb   : > { %v1754_v61 = vadd.f32 %v1753_v56, %v5089_v12  ;;  %v3877_v57 = vpop.f32.mrb[62].mxu1  ;;  %3886 = vmatprep.subr.bf16.mxu0 %v1788_v5  ;;  %v3218_v56 = vld [vmem:[%s5915_s11 + $0x98] sm:$0xff] }
 0x5cc   : > { %v1765_v59 = vadd.f32 %v3877_v57, %v5093_v27  ;;  %v1756_v29 = vpop.f32.mrb[63].mxu1  ;;  %3887 = vmatpush3.bf16.msra.mxu0 %v1788_v5  ;;  %v1782_v54 = vmax.f32 %v1762_v32, 0.0  ;;  %4330 = vmatprep.subr.bf16.mxu1 %v4329_v3  ;;  %v3216_v5 = vld [vmem:[%s5915_s11 + $0x88] sm:$0xff]  ;;  %v3219_v57 = vld [vmem:[%s5915_s11 + $0xa0] sm:$0xff] }
 0x5cd   : > { %v1757_v9 = vadd.f32 %v1756_v29, %v5098_v16  ;;  %3888 = vmatprep.subr.bf16.mxu0 %v1789_v6  ;;  %v1780_v19 = vmax.f32 %v1754_v61, 0.0  ;;  %4332 = vmatpush3.bf16.msra.mxu1 %v4329_v3  ;;  %v4337_v61 = vpack.c.bf16 %v3218_v56, %v3217_v11  ;;  %v3227_v3 = vld [vmem:[%s5915_s11 + $0xe0] sm:$0xff]  ;;  %v5992_v56 = vmax.f32 %v5224_v41, 0.0 }
 0x5ce   : > { %v1783_v44 = vmax.f32 %v1765_v59, 0.0  ;;  %v3220_v59 = vld [vmem:[%s5915_s11 + $0xa8] sm:$0xff] }
 0x5cf   : > { %v1781_v15 = vmax.f32 %v1757_v9, 0.0  ;;  %v4341_v29 = vpack.c.bf16 %v3220_v59, %v3219_v57  ;;  %v3221_v9 = vld [vmem:[%s5915_s11 + $0xb0] sm:$0xff] }
 0x5d0   : > { %v1791_v28 = vpack.c.bf16 %v1783_v44, %v1782_v54  ;;  %3889 = vmatpush3.bf16.msra.mxu0 %v1789_v6  ;;  %v3215_v6 = vld [vmem:[%s5915_s11 + $0x80] sm:$0xff]  ;;  %v3222_v54 = vld [vmem:[%s5915_s11 + $0xb8] sm:$0xff] }
 0x5d1   : > { %v1790_v63 = vpack.c.bf16 %v1781_v15, %v1780_v19  ;;  %v4333_v32 = vpack.c.bf16 %v3216_v5, %v3215_v6  ;;  %v4345_v44 = vpack.c.bf16 %v3222_v54, %v3221_v9  ;;  %v3223_v19 = vld [vmem:[%s5915_s11 + $0xc0] sm:$0xff]  ;;  %v3224_v15 = vld [vmem:[%s5915_s11 + $0xc8] sm:$0xff]  ;;  %v5994_v54 = vmax.f32 %v5236_v55, 0.0 }
 0x5d2   : > { %v3228_v6 = vld [vmem:[%s5915_s11 + $0xe8] sm:$0xff]  ;;  %v5998_v55 = vmax.f32 %v5260_v1, 0.0  ;;  %v6002_v1 = vmax.f32 %v5284_v58, 0.0  ;;  %v6006_v58 = vmax.f32 %v5308_v4, 0.0  ;;  %v3214_v4 = vld [vmem:[%s5991_s30 + $0x1] ss:$0 sm:$0xff] }
 0x5d3   : > { %3890 = vmatprep.subr.bf16.mxu0 %v1790_v63  ;;  %v4357_v5 = vpack.c.bf16 %v3228_v6, %v3227_v3 }
 0x5d4   : > { %3891 = vmatpush3.bf16.msra.mxu0 %v1790_v63  ;;  %v3225_v63 = vld [vmem:[%s5915_s11 + $0xd0] sm:$0xff] }
 0x5d5   : > { %3892 = vmatprep.subr.bf16.mxu0 %v1791_v28  ;;  %v4353_v13 = vpack.c.bf16 %v3226_v17, %v3225_v63  ;;  %v5996_v17 = vmax.f32 %v5248_v62, 0.0  ;;  %v6000_v62 = vmax.f32 %v5272_v18, 0.0  ;;  %v6004_v18 = vmax.f32 %v5296_v52, 0.0  ;;  %v3229_v52 = vld [vmem:[%s5915_s11 + $0xf0] sm:$0xff] }
 0x5d8   : > { %3893 = vmatpush3.bf16.msra.mxu0 %v1791_v28  ;;  %v4349_v28 = vpack.c.bf16 %v3224_v15, %v3223_v19  ;;  %v5995_v19 = vmax.f32 %v5229_v25, 0.0  ;;  %v5999_v25 = vmax.f32 %v5253_v20, 0.0  ;;  %v6003_v20 = vmax.f32 %v5277_v22, 0.0 }
 0x5d9   : > { %4334 = vmatprep.subr.bf16.mxu0 %v4333_v32  ;;  %v6007_v22 = vmax.f32 %v5301_v23, 0.0 }
 0x5db   : > { %3895 = vmatmul.mubr.bf16.vlgmr.msra.gmra.mrb[48].mxu0 %v5101_v43 }
 0x5dc   : > { %3898 = vmatprep.mubr.bf16.mxu0 %v5105_v40  ;;  %4336 = vmatpush3.bf16.msra.mxu0 %v4333_v32 }
 0x5dd   : > { %4338 = vmatprep.subr.bf16.mxu0 %v4337_v61 }
 0x5e0   : > { %4340 = vmatpush3.bf16.msra.mxu0 %v4337_v61 }
 0x5e1   : > { %4342 = vmatprep.subr.bf16.mxu0 %v4341_v29 }
 0x5e3   : > { %3899 = vmatmul.mubr.bf16.gmra.mrb[52].mxu0 %v5107_v21 }
 0x5e4   : > { %3902 = vmatprep.mubr.bf16.mxu0 %v5111_v10  ;;  %4344 = vmatpush3.bf16.msra.mxu0 %v4341_v29  ;;  %v5993_v29 = vmax.f32 %v5221_v24, 0.0  ;;  %v5997_v24 = vmax.f32 %v5241_v38, 0.0  ;;  %v6001_v38 = vmax.f32 %v5265_v8, 0.0  ;;  %v6005_v8 = vmax.f32 %v5289_v48, 0.0  ;;  %v3230_v48 = vld [vmem:[%s5915_s11 + $0xf8] sm:$0xff] }
 0x5e5   : > { %4346 = vmatprep.subr.bf16.mxu0 %v4345_v44 }
 0x5e8   : > { %4348 = vmatpush3.bf16.msra.mxu0 %v4345_v44 }
 0x5e9   : > { %4350 = vmatprep.subr.bf16.mxu0 %v4349_v28 }
 0x5eb   : > { %3903 = vmatmul.mubr.bf16.gmra.mrb[56].mxu0 %v5114_v42 }
 0x5ec   : > { %3906 = vmatprep.mubr.bf16.mxu0 %v5117_v14  ;;  %4352 = vmatpush3.bf16.msra.mxu0 %v4349_v28 }
 0x5ed   : > { %4354 = vmatprep.subr.bf16.mxu0 %v4353_v13 }
 0x5f0   : > { %4356 = vmatpush3.bf16.msra.mxu0 %v4353_v13 }
 0x5f1   : > { %4358 = vmatprep.subr.bf16.mxu0 %v4357_v5 }
 0x5f3   : > { %3907 = vmatmul.mubr.bf16.gmra.mrb[60].mxu0 %v5121_v30 }
 0x5f4   : > { %4360 = vmatpush3.bf16.msra.mxu0 %v4357_v5 }
 0x6ae   : > { %v3896_v11 = vpop.f32.mrb[48].mxu0 }
 0x6af   : > { %v1826_v32 = vpop.f32.mrb[49].mxu0  ;;  %v1891_v44 = vadd.f32 %v3896_v11, %v5994_v54 }
 0x6b0   : > { %v1889_v61 = vadd.f32 %v1826_v32, %v5992_v56  ;;  %v3897_v57 = vpop.f32.mrb[50].mxu0 }
 0x6b1   : > { %v1829_v59 = vpop.f32.mrb[51].mxu0  ;;  %v1892_v15 = vadd.f32 %v3897_v57, %v5995_v19 }
 0x6b2   : > { %v1890_v9 = vadd.f32 %v1829_v59, %v5993_v29  ;;  %3942 = vmatprep.mubr.f32.mxu1 %v1889_v61 }
 0x6b4   : > { %3943 = vmatmul.mubr.f32.vlgmr.msra.gmra.mrb[64].mxu1 %v1890_v9 }
 0x6b5   : > { %3945 = vmatprep.mubr.f32.mxu1 %v1891_v44 }
 0x6b6   : > { %v3900_v28 = vpop.f32.mrb[52].mxu0 }
 0x6b7   : > { %v1842_v63 = vpop.f32.mrb[53].mxu0  ;;  %v1895_v5 = vadd.f32 %v3900_v28, %v5998_v55 }
 0x6b8   : > { %v1893_v41 = vadd.f32 %v1842_v63, %v5996_v17  ;;  %v3901_v13 = vpop.f32.mrb[54].mxu0  ;;  %3946 = vmatmul.mubr.f32.gmra.mrb[66].mxu1 %v1892_v15 }
 0x6b9   : > { %v1845_v3 = vpop.f32.mrb[55].mxu0  ;;  %v1896_v11 = vadd.f32 %v3901_v13, %v5999_v25 }
 0x6ba   : > { %v1894_v6 = vadd.f32 %v1845_v3, %v5997_v24  ;;  %3948 = vmatprep.mubr.f32.mxu1 %v1893_v41  ;;  %v4361_v3 = vpack.c.bf16 %v3230_v48, %v3229_v52 }
 0x6bc   : > { %3949 = vmatmul.mubr.f32.gmra.mrb[68].mxu1 %v1894_v6  ;;  %4362 = vmatprep.subr.bf16.mxu0 %v4361_v3 }
 0x6bd   : > { %3951 = vmatprep.mubr.f32.mxu1 %v1895_v5  ;;  %4364 = vmatpush3.bf16.msra.mxu0 %v4361_v3 }
 0x6be   : > { %v3904_v32 = vpop.f32.mrb[56].mxu0 }
 0x6bf   : > { %v1858_v56 = vpop.f32.mrb[57].mxu0  ;;  %v1899_v9 = vadd.f32 %v3904_v32, %v6002_v1 }
 0x6c0   : > { %v1897_v61 = vadd.f32 %v1858_v56, %v6000_v62  ;;  %v3905_v57 = vpop.f32.mrb[58].mxu0  ;;  %3952 = vmatmul.mubr.f32.gmra.mrb[70].mxu1 %v1896_v11 }
 0x6c1   : > { %v1861_v59 = vpop.f32.mrb[59].mxu0  ;;  %v1900_v54 = vadd.f32 %v3905_v57, %v6003_v20 }
 0x6c2   : > { %v1898_v29 = vadd.f32 %v1861_v59, %v6001_v38  ;;  %3954 = vmatprep.mubr.f32.mxu1 %v1897_v61 }
 0x6c4   : > { %3955 = vmatmul.mubr.f32.gmra.mrb[72].mxu1 %v1898_v29 }
 0x6c5   : > { %3957 = vmatprep.mubr.f32.mxu1 %v1899_v9 }
 0x6c6   : > { %v3908_v44 = vpop.f32.mrb[60].mxu0 }
 0x6c7   : > { %v1874_v19 = vpop.f32.mrb[61].mxu0  ;;  %v1903_v41 = vadd.f32 %v3908_v44, %v6006_v58 }
 0x6c8   : > { %v1901_v15 = vadd.f32 %v1874_v19, %v6004_v18  ;;  %v3909_v28 = vpop.f32.mrb[62].mxu0  ;;  %3958 = vmatmul.mubr.f32.gmra.mrb[74].mxu1 %v1900_v54 }
 0x6c9   : > { %v1877_v63 = vpop.f32.mrb[63].mxu0  ;;  %v1904_v13 = vadd.f32 %v3909_v28, %v6007_v22 }
 0x6ca   : > { %v1902_v17 = vadd.f32 %v1877_v63, %v6005_v8  ;;  %3960 = vmatprep.mubr.f32.mxu1 %v1901_v15 }
 0x6cc   : > { %3961 = vmatmul.mubr.f32.gmra.mrb[76].mxu1 %v1902_v17 }
 0x6cd   : > { %3963 = vmatprep.mubr.f32.mxu1 %v1903_v41 }
 0x6d0   : > { %3964 = vmatmul.mubr.f32.gmra.mrb[78].mxu1 %v1904_v13 }
 0x6d1   : > { %4038 = vmatprep.mubr.bf16.mxu1 %v4821_v37 }
 0x787   : > { %v3944_v23 = vpop.f32.mrb[64].mxu1 }
 0x788   : > { %v2002_v24 = vadd.f32 %v3944_v23, %v3214_v4  ;;  %v1996_v6 = vpop.f32.mrb[65].mxu1 }
 0x789   : > { %v1997_v55 = vadd.f32 %v3214_v4, %v1996_v6 }
 0x78a   : > { %v2076_v25 = vmax.f32 %v2002_v24, 0.0 }
 0x78b   : > { %v2075_v37 = vmax.f32 %v1997_v55, 0.0  ;;  %v3947_v5 = vpop.f32.mrb[66].mxu1 }
 0x78c   : > { %v2012_v11 = vadd.f32 %v3947_v5, %v3214_v4  ;;  %v2006_v32 = vpop.f32.mrb[67].mxu1 }
 0x78d   : > { %v2007_v56 = vadd.f32 %v3214_v4, %v2006_v32  ;;  %3998 = vmatprep.mubr.f32.mxu0 %v2075_v37 }
 0x78e   : > { %3999 = vmatmul.mubr.f32.vlgmr.msra.gmra.mrb[64].mxu0 %v2076_v25  ;;  %v2078_v57 = vmax.f32 %v2012_v11, 0.0 }
 0x78f   : > { %v2077_v62 = vmax.f32 %v2007_v56, 0.0  ;;  %v3950_v61 = vpop.f32.mrb[68].mxu1 }
 0x790   : > { %v2022_v59 = vadd.f32 %v3950_v61, %v3214_v4  ;;  %v2016_v38 = vpop.f32.mrb[69].mxu1 }
 0x791   : > { %v2017_v29 = vadd.f32 %v3214_v4, %v2016_v38  ;;  %4001 = vmatprep.mubr.f32.mxu0 %v2077_v62 }
 0x792   : > { %4002 = vmatmul.mubr.f32.gmra.mrb[66].mxu0 %v2078_v57  ;;  %v2080_v20 = vmax.f32 %v2022_v59, 0.0  ;;  %v5482_v59 = vld [vmem:[%s5916_s12 + $0x1] ss:$0 sm:$0xff] }
 0x793   : > { %v2079_v1 = vmax.f32 %v2017_v29, 0.0  ;;  %v3953_v9 = vpop.f32.mrb[70].mxu1 }
 0x794   : > { %v2032_v54 = vadd.f32 %v3953_v9, %v3214_v4  ;;  %v2026_v44 = vpop.f32.mrb[71].mxu1 }
 0x795   : > { %v2027_v19 = vadd.f32 %v3214_v4, %v2026_v44  ;;  %4004 = vmatprep.mubr.f32.mxu0 %v2079_v1 }
 0x796   : > { %4005 = vmatmul.mubr.f32.gmra.mrb[68].mxu0 %v2080_v20  ;;  %v2082_v28 = vmax.f32 %v2032_v54, 0.0 }
 0x797   : > { %v2081_v18 = vmax.f32 %v2027_v19, 0.0  ;;  %v3956_v15 = vpop.f32.mrb[72].mxu1 }
 0x798   : > { %v2042_v63 = vadd.f32 %v3956_v15, %v3214_v4  ;;  %v2036_v8 = vpop.f32.mrb[73].mxu1 }
 0x799   : > { %v2037_v17 = vadd.f32 %v3214_v4, %v2036_v8  ;;  %4007 = vmatprep.mubr.f32.mxu0 %v2081_v18 }
 0x79a   : > { %4008 = vmatmul.mubr.f32.gmra.mrb[70].mxu0 %v2082_v28  ;;  %v2084_v22 = vmax.f32 %v2042_v63, 0.0 }
 0x79b   : > { %v2083_v58 = vmax.f32 %v2037_v17, 0.0  ;;  %v3959_v41 = vpop.f32.mrb[74].mxu1 }
 0x79c   : > { %v2052_v13 = vadd.f32 %v3959_v41, %v3214_v4  ;;  %v2046_v52 = vpop.f32.mrb[75].mxu1 }
 0x79d   : > { %v2047_v48 = vadd.f32 %v3214_v4, %v2046_v52  ;;  %4010 = vmatprep.mubr.f32.mxu0 %v2083_v58 }
 0x79e   : > { %4011 = vmatmul.mubr.f32.gmra.mrb[72].mxu0 %v2084_v22  ;;  %v2086_v24 = vmax.f32 %v2052_v13, 0.0 }
 0x79f   : > { %v2085_v3 = vmax.f32 %v2047_v48, 0.0  ;;  %v3962_v23 = vpop.f32.mrb[76].mxu1 }
 0x7a0   : > { %v2062_v6 = vadd.f32 %v3962_v23, %v3214_v4  ;;  %v2056_v55 = vpop.f32.mrb[77].mxu1 }
 0x7a1   : > { %v2057_v37 = vadd.f32 %v3214_v4, %v2056_v55  ;;  %4013 = vmatprep.mubr.f32.mxu0 %v2085_v3 }
 0x7a2   : > { %4014 = vmatmul.mubr.f32.gmra.mrb[74].mxu0 %v2086_v24  ;;  %v2088_v11 = vmax.f32 %v2062_v6, 0.0 }
 0x7a3   : > { %v2087_v5 = vmax.f32 %v2057_v37, 0.0  ;;  %v3965_v25 = vpop.f32.mrb[78].mxu1 }
 0x7a4   : > { %v2072_v32 = vadd.f32 %v3965_v25, %v3214_v4  ;;  %v2066_v56 = vpop.f32.mrb[79].mxu1 }
 0x7a5   : > { %v2067_v62 = vadd.f32 %v3214_v4, %v2066_v56  ;;  %4016 = vmatprep.mubr.f32.mxu0 %v2087_v5 }
 0x7a6   : > { %4017 = vmatmul.mubr.f32.gmra.mrb[76].mxu0 %v2088_v11  ;;  %v2090_v57 = vmax.f32 %v2072_v32, 0.0 }
 0x7a7   : > { %v2089_v61 = vmax.f32 %v2067_v62, 0.0 }
 0x7a9   : > { %4019 = vmatprep.mubr.f32.mxu0 %v2089_v61 }
 0x7aa   : > { %4020 = vmatmul.mubr.f32.gmra.mrb[78].mxu0 %v2090_v57 }
 0x7ab   : > { %4070 = vmatprep.mubr.bf16.mxu0 %v4977_v31 }
 0x861   : > { %v4000_v38 = vpop.f32.mrb[64].mxu0 }
 0x862   : > { %v5485_v29 = vadd.f32 %v4000_v38, %v5482_v59  ;;  %v2182_v1 = vpop.f32.mrb[65].mxu0 }
 0x863   : > { %v5488_v4 = vadd.f32 %v5482_v59, %v2182_v1 }
 0x864   : > { %v2262_v9 = vmax.f32 %v5485_v29, 0.0 }
 0x865   : > { %v2261_v20 = vmax.f32 %v5488_v4, 0.0  ;;  %v4003_v54 = vpop.f32.mrb[66].mxu0 }
 0x866   : > { %v5493_v31 = vadd.f32 %v4003_v54, %v5482_v59  ;;  %v2192_v44 = vpop.f32.mrb[67].mxu0 }
 0x867   : > { %v2277_v19 = vpack.c.bf16 %v2262_v9, %v2261_v20  ;;  %v5500_v18 = vadd.f32 %v5482_v59, %v2192_v44 }
 0x868   : > { %v2264_v15 = vmax.f32 %v5493_v31, 0.0 }
 0x869   : > { %v2263_v28 = vmax.f32 %v5500_v18, 0.0  ;;  %v4006_v63 = vpop.f32.mrb[68].mxu0  ;;  %4022 = vmatprep.subr.bf16.mxu1 %v2277_v19 }
 0x86a   : > { %v5505_v8 = vadd.f32 %v4006_v63, %v5482_v59  ;;  %v2202_v17 = vpop.f32.mrb[69].mxu0  ;;  %4023 = vmatpush3.bf16.msra.mxu1 %v2277_v19 }
 0x86b   : > { %v2278_v58 = vpack.c.bf16 %v2264_v15, %v2263_v28  ;;  %v5512_v41 = vadd.f32 %v5482_v59, %v2202_v17 }
 0x86c   : > { %v2266_v22 = vmax.f32 %v5505_v8, 0.0 }
 0x86d   : > { %v2265_v13 = vmax.f32 %v5512_v41, 0.0  ;;  %v4009_v52 = vpop.f32.mrb[70].mxu0  ;;  %4024 = vmatprep.subr.bf16.mxu1 %v2278_v58 }
 0x86e   : > { %v5517_v48 = vadd.f32 %v4009_v52, %v5482_v59  ;;  %v2212_v3 = vpop.f32.mrb[71].mxu0  ;;  %4025 = vmatpush3.bf16.msra.mxu1 %v2278_v58 }
 0x86f   : > { %v2279_v23 = vpack.c.bf16 %v2266_v22, %v2265_v13  ;;  %v5524_v24 = vadd.f32 %v5482_v59, %v2212_v3 }
 0x870   : > { %v2268_v6 = vmax.f32 %v5517_v48, 0.0 }
 0x871   : > { %v2267_v55 = vmax.f32 %v5524_v24, 0.0  ;;  %v4012_v37 = vpop.f32.mrb[72].mxu0  ;;  %4026 = vmatprep.subr.bf16.mxu1 %v2279_v23 }
 0x872   : > { %v5529_v5 = vadd.f32 %v4012_v37, %v5482_v59  ;;  %v2222_v25 = vpop.f32.mrb[73].mxu0  ;;  %4027 = vmatpush3.bf16.msra.mxu1 %v2279_v23 }
 0x873   : > { %v2280_v11 = vpack.c.bf16 %v2268_v6, %v2267_v55  ;;  %v5536_v32 = vadd.f32 %v5482_v59, %v2222_v25 }
 0x874   : > { %v5959_v56 = vmax.f32 %v5529_v5, 0.0  ;;  %v6012_v8 = vmax.f32 %v5529_v5, 0.0 }
 0x875   : > { %v5960_v62 = vmax.f32 %v5536_v32, 0.0  ;;  %v4015_v61 = vpop.f32.mrb[74].mxu0  ;;  %4028 = vmatprep.subr.bf16.mxu1 %v2280_v11 }
 0x876   : > { %v5541_v57 = vadd.f32 %v4015_v61, %v5482_v59  ;;  %v2232_v38 = vpop.f32.mrb[75].mxu0  ;;  %4029 = vmatpush3.bf16.msra.mxu1 %v2280_v11 }
 0x877   : > { %v2281_v1 = vpack.c.bf16 %v5959_v56, %v5960_v62  ;;  %v5548_v54 = vadd.f32 %v5482_v59, %v2232_v38 }
 0x878   : > { %v5957_v44 = vmax.f32 %v5541_v57, 0.0  ;;  %v6014_v48 = vmax.f32 %v5541_v57, 0.0 }
 0x879   : > { %v5958_v19 = vmax.f32 %v5548_v54, 0.0  ;;  %v4018_v63 = vpop.f32.mrb[76].mxu0  ;;  %4030 = vmatprep.subr.bf16.mxu1 %v2281_v1  ;;  %v6013_v24 = vmax.f32 %v5548_v54, 0.0 }
 0x87a   : > { %v5553_v17 = vadd.f32 %v4018_v63, %v5482_v59  ;;  %v2242_v58 = vpop.f32.mrb[77].mxu0  ;;  %4031 = vmatpush3.bf16.msra.mxu1 %v2281_v1 }
 0x87b   : > { %v2282_v52 = vpack.c.bf16 %v5957_v44, %v5958_v19  ;;  %v5560_v3 = vadd.f32 %v5482_v59, %v2242_v58 }
 0x87c   : > { %v5955_v23 = vmax.f32 %v5553_v17, 0.0  ;;  %v6016_v5 = vmax.f32 %v5553_v17, 0.0 }
 0x87d   : > { %v5956_v37 = vmax.f32 %v5560_v3, 0.0  ;;  %v4021_v25 = vpop.f32.mrb[78].mxu0  ;;  %4032 = vmatprep.subr.bf16.mxu1 %v2282_v52 }
 0x87e   : > { %v5565_v11 = vadd.f32 %v4021_v25, %v5482_v59  ;;  %v2252_v61 = vpop.f32.mrb[79].mxu0  ;;  %4033 = vmatpush3.bf16.msra.mxu1 %v2282_v52  ;;  %v3233_v52 = vld [vmem:[%s5913_s9 + $0x100] sm:$0xff] }
 0x87f   : > { %v2283_v38 = vpack.c.bf16 %v5955_v23, %v5956_v37  ;;  %v5572_v1 = vadd.f32 %v5482_v59, %v2252_v61  ;;  %v6008_v59 = vld [vmem:[#allocation8_spill] sm:$0xff] }
 0x880   : > { %v5953_v63 = vmax.f32 %v5565_v11, 0.0  ;;  %v3238_v61 = vld [vmem:[%s5913_s9 + $0x128] sm:$0xff]  ;;  %v6018_v57 = vmax.f32 %v5565_v11, 0.0 }
 0x881   : > { %v5954_v58 = vmax.f32 %v5572_v1, 0.0  ;;  %4034 = vmatprep.subr.bf16.mxu1 %v2283_v38  ;;  %v6017_v54 = vmax.f32 %v5572_v1, 0.0  ;;  %v2948_v1 = vstv %s2947_s22  ;;  %s3046_s22 = scalar_lea.sflag [#allocation5], %s537_s25 }
 0x882   : > { %4035 = vmatpush3.bf16.msra.mxu1 %v2283_v38  ;;  %4498 = vrcp.f32 %v2948_v1  ;;  %v2961_v1 = vld [vmem:[%s5917_s13 + $0x40] sm:$0xff] }
 0x883   : > { %v2284_v25 = vpack.c.bf16 %v5953_v63, %v5954_v58 }
 0x885   : > { %4036 = vmatprep.subr.bf16.mxu1 %v2284_v25 }
 0x886   : > { %4037 = vmatpush3.bf16.msra.mxu1 %v2284_v25  ;;  %v3239_v25 = vld [vmem:[%s5913_s9 + $0x130] sm:$0xff] }
 0x889   : > { %4039 = vmatmul.mubr.bf16.vlgmr.msra.gmra.mrb[80].mxu1 %v4930_v46  ;;  %v3234_v46 = vld [vmem:[%s5913_s9 + $0x108] sm:$0xff] }
 0x88a   : > { %4042 = vmatprep.mubr.bf16.mxu1 %v4932_v47  ;;  %v3235_v47 = vld [vmem:[%s5913_s9 + $0x110] sm:$0xff] }
 0x88c   : > { %v4499_v11 = vpop.eup %4498 }
 0x88d   : > { %4453 = vpush %v4499_v11  ;;  %v2962_v11 = vld [vmem:[%s5917_s13 + $0x48] sm:$0xff] }
 0x891   : > { %4043 = vmatmul.mubr.bf16.gmra.mrb[84].mxu1 %v4937_v49  ;;  %v4365_v49 = vpack.c.bf16 %v3234_v46, %v3233_v52  ;;  %v3241_v46 = vld [vmem:[%s5913_s9 + $0x140] sm:$0xff] }
 0x892   : > { %4046 = vmatprep.mubr.bf16.mxu1 %v4939_v50  ;;  %v3236_v50 = vld [vmem:[%s5913_s9 + $0x118] sm:$0xff] }
 0x893   : > { %4366 = vmatprep.subr.bf16.mxu1 %v4365_v49 }
 0x894   : > { %4368 = vmatpush3.bf16.msra.mxu1 %v4365_v49 }
 0x899   : > { %4047 = vmatmul.mubr.bf16.gmra.mrb[88].mxu1 %v4944_v53  ;;  %v4369_v53 = vpack.c.bf16 %v3236_v50, %v3235_v47  ;;  %v3242_v47 = vld [vmem:[%s5913_s9 + $0x148] sm:$0xff]  ;;  %v3243_v50 = vld [vmem:[%s5913_s9 + $0x150] sm:$0xff] }
 0x89a   : > { %4050 = vmatprep.mubr.bf16.mxu1 %v4946_v36  ;;  %v3237_v36 = vld [vmem:[%s5913_s9 + $0x120] sm:$0xff]  ;;  %v4381_v49 = vpack.c.bf16 %v3242_v47, %v3241_v46  ;;  %v6009_v46 = vld [vmem:[#allocation9_spill] sm:$0xff] }
 0x89b   : > { %4370 = vmatprep.subr.bf16.mxu1 %v4369_v53  ;;  %v4373_v38 = vpack.c.bf16 %v3238_v61, %v3237_v36  ;;  %v3245_v61 = vld [vmem:[%s5913_s9 + $0x160] sm:$0xff] }
 0x89c   : > { %4372 = vmatpush3.bf16.msra.mxu1 %v4369_v53  ;;  %v3244_v53 = vld [vmem:[%s5913_s9 + $0x158] sm:$0xff] }
 0x89d   : > { %4374 = vmatprep.subr.bf16.mxu1 %v4373_v38  ;;  %v4385_v36 = vpack.c.bf16 %v3244_v53, %v3243_v50 }
 0x8a0   : > { %4376 = vmatpush3.bf16.msra.mxu1 %v4373_v38  ;;  %v3246_v38 = vld [vmem:[%s5913_s9 + $0x168] sm:$0xff] }
 0x8a1   : > { %4051 = vmatmul.mubr.bf16.gmra.mrb[92].mxu1 %v6008_v59  ;;  %v3240_v59 = vld [vmem:[%s5913_s9 + $0x138] sm:$0xff] }
 0x8a2   : > { %v4377_v52 = vpack.c.bf16 %v3240_v59, %v3239_v25  ;;  %v4389_v25 = vpack.c.bf16 %v3246_v38, %v3245_v61 }
 0x8a4   : > { %4378 = vmatprep.subr.bf16.mxu1 %v4377_v52 }
 0x8a5   : > { %4380 = vmatpush3.bf16.msra.mxu1 %v4377_v52 }
 0x8a6   : > { %4382 = vmatprep.subr.bf16.mxu1 %v4381_v49 }
 0x8a9   : > { %4384 = vmatpush3.bf16.msra.mxu1 %v4381_v49 }
 0x8aa   : > { %4386 = vmatprep.subr.bf16.mxu1 %v4385_v36 }
 0x8ad   : > { %4388 = vmatpush3.bf16.msra.mxu1 %v4385_v36 }
 0x8ae   : > { %4390 = vmatprep.subr.bf16.mxu1 %v4389_v25 }
 0x8b1   : > { %4392 = vmatpush3.bf16.msra.mxu1 %v4389_v25 }
 0x95c   : > { %v4040_v59 = vpop.f32.mrb[80].mxu1 }
 0x95d   : > { %v2328_v47 = vadd.f32 %v4040_v59, %v6009_v46  ;;  %v2319_v52 = vpop.f32.mrb[81].mxu1  ;;  %v6010_v59 = vld [vmem:[#allocation10_spill] sm:$0xff] }
 0x95e   : > { %v2320_v50 = vadd.f32 %v2319_v52, %v5031_v51  ;;  %v4041_v53 = vpop.f32.mrb[82].mxu1 }
 0x95f   : > { %v2331_v63 = vadd.f32 %v4041_v53, %v5034_v33  ;;  %v2322_v58 = vpop.f32.mrb[83].mxu1  ;;  %v2384_v37 = vmax.f32 %v2328_v47, 0.0 }
 0x960   : > { %v2323_v23 = vadd.f32 %v2322_v58, %v5038_v39  ;;  %v2382_v49 = vmax.f32 %v2320_v50, 0.0 }
 0x961   : > { %v2385_v44 = vmax.f32 %v2331_v63, 0.0 }
 0x962   : > { %v2383_v19 = vmax.f32 %v2323_v23, 0.0 }
 0x963   : > { %v2399_v61 = vpack.c.bf16 %v2385_v44, %v2384_v37 }
 0x964   : > { %v2398_v36 = vpack.c.bf16 %v2383_v19, %v2382_v49  ;;  %v4044_v38 = vpop.f32.mrb[84].mxu1 }
 0x965   : > { %v2344_v25 = vadd.f32 %v4044_v38, %v5045_v0  ;;  %v2335_v56 = vpop.f32.mrb[85].mxu1 }
 0x966   : > { %v2336_v46 = vadd.f32 %v2335_v56, %v6010_v59  ;;  %v4045_v62 = vpop.f32.mrb[86].mxu1  ;;  %4054 = vmatprep.subr.bf16.mxu0 %v2398_v36 }
 0x967   : > { %v2347_v51 = vadd.f32 %v4045_v62, %v5053_v45  ;;  %v2338_v33 = vpop.f32.mrb[87].mxu1  ;;  %4055 = vmatpush3.bf16.msra.mxu0 %v2398_v36  ;;  %v2388_v63 = vmax.f32 %v2344_v25, 0.0 }
 0x968   : > { %v2339_v39 = vadd.f32 %v2338_v33, %v5058_v26  ;;  %4056 = vmatprep.subr.bf16.mxu0 %v2399_v61  ;;  %v2386_v23 = vmax.f32 %v2336_v46, 0.0 }
 0x969   : > { %v2389_v58 = vmax.f32 %v2347_v51, 0.0 }
 0x96a   : > { %v2387_v44 = vmax.f32 %v2339_v39, 0.0 }
 0x96b   : > { %v2401_v19 = vpack.c.bf16 %v2389_v58, %v2388_v63  ;;  %4057 = vmatpush3.bf16.msra.mxu0 %v2399_v61 }
 0x96c   : > { %v2400_v37 = vpack.c.bf16 %v2387_v44, %v2386_v23  ;;  %v4048_v0 = vpop.f32.mrb[88].mxu1 }
 0x96d   : > { %v2360_v47 = vadd.f32 %v4048_v0, %v5065_v60  ;;  %v2351_v56 = vpop.f32.mrb[89].mxu1  ;;  %v3257_v0 = vld [vmem:[%s5915_s11 + $0x130] sm:$0xff] }
 0x96e   : > { %v2352_v52 = vadd.f32 %v2351_v56, %v5069_v34  ;;  %v4049_v50 = vpop.f32.mrb[90].mxu1  ;;  %4058 = vmatprep.subr.bf16.mxu0 %v2400_v37 }
 0x96f   : > { %v2363_v45 = vadd.f32 %v4049_v50, %v5073_v35  ;;  %v2354_v62 = vpop.f32.mrb[91].mxu1  ;;  %4059 = vmatpush3.bf16.msra.mxu0 %v2400_v37  ;;  %v2392_v53 = vmax.f32 %v2360_v47, 0.0  ;;  %v3258_v47 = vld [vmem:[%s5915_s11 + $0x138] sm:$0xff]  ;;  %v3260_v50 = vld [vmem:[%s5915_s11 + $0x148] sm:$0xff] }
 0x970   : > { %v2355_v26 = vadd.f32 %v2354_v62, %v5078_v7  ;;  %4060 = vmatprep.subr.bf16.mxu0 %v2401_v19  ;;  %v2390_v36 = vmax.f32 %v2352_v52, 0.0  ;;  %v4409_v56 = vpack.c.bf16 %v3258_v47, %v3257_v0  ;;  %v3259_v52 = vld [vmem:[%s5915_s11 + $0x140] sm:$0xff]  ;;  %v3261_v62 = vld [vmem:[%s5915_s11 + $0x150] sm:$0xff] }
 0x971   : > { %v2393_v49 = vmax.f32 %v2363_v45, 0.0  ;;  %v4413_v45 = vpack.c.bf16 %v3260_v50, %v3259_v52 }
 0x972   : > { %v2391_v61 = vmax.f32 %v2355_v26, 0.0  ;;  %v3262_v26 = vld [vmem:[%s5915_s11 + $0x158] sm:$0xff] }
 0x973   : > { %v2403_v38 = vpack.c.bf16 %v2393_v49, %v2392_v53  ;;  %4061 = vmatpush3.bf16.msra.mxu0 %v2401_v19  ;;  %v4417_v53 = vpack.c.bf16 %v3262_v26, %v3261_v62  ;;  %v3263_v49 = vld [vmem:[%s5915_s11 + $0x160] sm:$0xff] }
 0x974   : > { %v2402_v25 = vpack.c.bf16 %v2391_v61, %v2390_v36  ;;  %v4052_v60 = vpop.f32.mrb[92].mxu1  ;;  %v3264_v36 = vld [vmem:[%s5915_s11 + $0x168] sm:$0xff] }
 0x975   : > { %v2376_v59 = vadd.f32 %v4052_v60, %v5085_v2  ;;  %v2367_v34 = vpop.f32.mrb[93].mxu1  ;;  %v3247_v2 = vld [vmem:[%s5913_s9 + $0x170] sm:$0xff]  ;;  %v4421_v61 = vpack.c.bf16 %v3264_v36, %v3263_v49 }
 0x976   : > { %v2368_v46 = vadd.f32 %v2367_v34, %v5089_v12  ;;  %v4053_v51 = vpop.f32.mrb[94].mxu1  ;;  %4062 = vmatprep.subr.bf16.mxu0 %v2402_v25  ;;  %v3248_v12 = vld [vmem:[%s5913_s9 + $0x178] sm:$0xff] }
 0x977   : > { %v2379_v35 = vadd.f32 %v4053_v51, %v5093_v27  ;;  %v2370_v33 = vpop.f32.mrb[95].mxu1  ;;  %4063 = vmatpush3.bf16.msra.mxu0 %v2402_v25  ;;  %v2396_v39 = vmax.f32 %v2376_v59, 0.0  ;;  %v4393_v27 = vpack.c.bf16 %v3248_v12, %v3247_v2 }
 0x978   : > { %v2371_v7 = vadd.f32 %v2370_v33, %v5098_v16  ;;  %4064 = vmatprep.subr.bf16.mxu0 %v2403_v38  ;;  %v2394_v58 = vmax.f32 %v2368_v46, 0.0  ;;  %v3251_v16 = vld [vmem:[%s5915_s11 + $0x100] sm:$0xff] }
 0x979   : > { %v2397_v63 = vmax.f32 %v2379_v35, 0.0  ;;  %4394 = vmatprep.subr.bf16.mxu1 %v4393_v27 }
 0x97a   : > { %v2395_v23 = vmax.f32 %v2371_v7, 0.0  ;;  %4396 = vmatpush3.bf16.msra.mxu1 %v4393_v27 }
 0x97b   : > { %v2405_v44 = vpack.c.bf16 %v2397_v63, %v2396_v39  ;;  %4065 = vmatpush3.bf16.msra.mxu0 %v2403_v38 }
 0x97c   : > { %v2404_v19 = vpack.c.bf16 %v2395_v23, %v2394_v58 }
 0x97e   : > { %4066 = vmatprep.subr.bf16.mxu0 %v2404_v19 }
 0x97f   : > { %4067 = vmatpush3.bf16.msra.mxu0 %v2404_v19 }
 0x980   : > { %4068 = vmatprep.subr.bf16.mxu0 %v2405_v44 }
 0x983   : > { %4069 = vmatpush3.bf16.msra.mxu0 %v2405_v44 }
 0x986   : > { %4071 = vmatmul.mubr.bf16.vlgmr.msra.gmra.mrb[80].mxu0 %v5101_v43  ;;  %v3252_v43 = vld [vmem:[%s5915_s11 + $0x108] sm:$0xff] }
 0x987   : > { %4074 = vmatprep.mubr.bf16.mxu0 %v5105_v40  ;;  %v3253_v40 = vld [vmem:[%s5915_s11 + $0x110] sm:$0xff] }
 0x98e   : > { %4075 = vmatmul.mubr.bf16.gmra.mrb[84].mxu0 %v5107_v21  ;;  %v4397_v21 = vpack.c.bf16 %v3252_v43, %v3251_v16  ;;  %v3266_v43 = vld [vmem:[%s5915_s11 + $0x178] sm:$0xff] }
 0x98f   : > { %4078 = vmatprep.mubr.bf16.mxu0 %v5111_v10  ;;  %v3254_v10 = vld [vmem:[%s5915_s11 + $0x118] sm:$0xff] }
 0x990   : > { %4398 = vmatprep.subr.bf16.mxu0 %v4397_v21 }
 0x991   : > { %4400 = vmatpush3.bf16.msra.mxu0 %v4397_v21 }
 0x996   : > { %4079 = vmatmul.mubr.bf16.gmra.mrb[88].mxu0 %v5114_v42  ;;  %v4401_v42 = vpack.c.bf16 %v3254_v10, %v3253_v40  ;;  %v3250_v40 = vld [vmem:[%s5991_s30 + $0x2] ss:$0 sm:$0xff] }
 0x997   : > { %4082 = vmatprep.mubr.bf16.mxu0 %v5117_v14  ;;  %v3255_v14 = vld [vmem:[%s5915_s11 + $0x120] sm:$0xff] }
 0x998   : > { %4402 = vmatprep.subr.bf16.mxu0 %v4401_v42 }
 0x999   : > { %4404 = vmatpush3.bf16.msra.mxu0 %v4401_v42 }
 0x99e   : > { %4083 = vmatmul.mubr.bf16.gmra.mrb[92].mxu0 %v5121_v30  ;;  %v3256_v30 = vld [vmem:[%s5915_s11 + $0x128] sm:$0xff] }
 0x99f   : > { %v4405_v37 = vpack.c.bf16 %v3256_v30, %v3255_v14 }
 0x9a1   : > { %4406 = vmatprep.subr.bf16.mxu0 %v4405_v37 }
 0x9a2   : > { %4408 = vmatpush3.bf16.msra.mxu0 %v4405_v37 }
 0x9a3   : > { %4410 = vmatprep.subr.bf16.mxu0 %v4409_v56 }
 0x9a6   : > { %4412 = vmatpush3.bf16.msra.mxu0 %v4409_v56 }
 0x9a7   : > { %4414 = vmatprep.subr.bf16.mxu0 %v4413_v45 }
 0x9aa   : > { %4416 = vmatpush3.bf16.msra.mxu0 %v4413_v45 }
 0x9ab   : > { %4418 = vmatprep.subr.bf16.mxu0 %v4417_v53 }
 0x9ae   : > { %4420 = vmatpush3.bf16.msra.mxu0 %v4417_v53 }
 0x9af   : > { %4422 = vmatprep.subr.bf16.mxu0 %v4421_v61 }
 0x9b2   : > { %4424 = vmatpush3.bf16.msra.mxu0 %v4421_v61 }
 0xa59   : > { %v4072_v38 = vpop.f32.mrb[80].mxu0 }
 0xa5a   : > { %v2440_v25 = vpop.f32.mrb[81].mxu0  ;;  %v2505_v51 = vadd.f32 %v4072_v38, %v2263_v28  ;;  %v6011_v28 = vmax.f32 %v5536_v32, 0.0  ;;  %v6015_v32 = vmax.f32 %v5560_v3, 0.0  ;;  %v3265_v3 = vld [vmem:[%s5915_s11 + $0x170] sm:$0xff] }
 0xa5b   : > { %v2503_v60 = vadd.f32 %v2440_v25, %v2261_v20  ;;  %v4073_v59 = vpop.f32.mrb[82].mxu0  ;;  %v4425_v17 = vpack.c.bf16 %v3266_v43, %v3265_v3  ;;  %v2959_v3 = vld [vmem:[%s5917_s13 + $0x30] sm:$0xff]  ;;  %v2960_v43 = vld [vmem:[%s5917_s13 + $0x38] sm:$0xff] }
 0xa5c   : > { %v2443_v34 = vpop.f32.mrb[83].mxu0  ;;  %v2506_v35 = vadd.f32 %v4073_v59, %v2264_v15 }
 0xa5d   : > { %v2504_v46 = vadd.f32 %v2443_v34, %v2262_v9  ;;  %4118 = vmatprep.mubr.f32.mxu1 %v2503_v60  ;;  %4426 = vmatprep.subr.bf16.mxu0 %v4425_v17 }
 0xa5e   : > { %4428 = vmatpush3.bf16.msra.mxu0 %v4425_v17  ;;  %v4439_v17 = vpack.c.bf16 %v2960_v43, %v2959_v3 }
 0xa5f   : > { %4119 = vmatmul.mubr.f32.vlgmr.msra.gmra.mrb[96].mxu1 %v2504_v46 }
 0xa60   : > { %4121 = vmatprep.mubr.f32.mxu1 %v2505_v51 }
 0xa61   : > { %v4076_v33 = vpop.f32.mrb[84].mxu0 }
 0xa62   : > { %v2456_v7 = vpop.f32.mrb[85].mxu0  ;;  %v2509_v9 = vadd.f32 %v4076_v33, %v2267_v55 }
 0xa63   : > { %v2507_v4 = vadd.f32 %v2456_v7, %v2265_v13  ;;  %v4077_v20 = vpop.f32.mrb[86].mxu0  ;;  %4122 = vmatmul.mubr.f32.gmra.mrb[98].mxu1 %v2506_v35 }
 0xa64   : > { %v2459_v39 = vpop.f32.mrb[87].mxu0  ;;  %v2510_v31 = vadd.f32 %v4077_v20, %v2268_v6 }
 0xa65   : > { %v2508_v29 = vadd.f32 %v2459_v39, %v2266_v22  ;;  %4124 = vmatprep.mubr.f32.mxu1 %v2507_v4 }
 0xa67   : > { %4125 = vmatmul.mubr.f32.gmra.mrb[100].mxu1 %v2508_v29 }
 0xa68   : > { %4127 = vmatprep.mubr.f32.mxu1 %v2509_v9 }
 0xa69   : > { %v4080_v18 = vpop.f32.mrb[88].mxu0 }
 0xa6a   : > { %v2472_v15 = vpop.f32.mrb[89].mxu0  ;;  %v2513_v55 = vadd.f32 %v4080_v18, %v6013_v24 }
 0xa6b   : > { %v2511_v41 = vadd.f32 %v2472_v15, %v6011_v28  ;;  %v4081_v13 = vpop.f32.mrb[90].mxu0  ;;  %4128 = vmatmul.mubr.f32.gmra.mrb[102].mxu1 %v2510_v31 }
 0xa6c   : > { %v2475_v63 = vpop.f32.mrb[91].mxu0  ;;  %v2514_v6 = vadd.f32 %v4081_v13, %v6014_v48 }
 0xa6d   : > { %v2512_v22 = vadd.f32 %v2475_v63, %v6012_v8  ;;  %4130 = vmatprep.mubr.f32.mxu1 %v2511_v41 }
 0xa6f   : > { %4131 = vmatmul.mubr.f32.gmra.mrb[104].mxu1 %v2512_v22 }
 0xa70   : > { %4133 = vmatprep.mubr.f32.mxu1 %v2513_v55 }
 0xa71   : > { %v4084_v58 = vpop.f32.mrb[92].mxu0 }
 0xa72   : > { %v2488_v23 = vpop.f32.mrb[93].mxu0  ;;  %v2517_v27 = vadd.f32 %v4084_v58, %v6017_v54 }
 0xa73   : > { %v2515_v44 = vadd.f32 %v2488_v23, %v6015_v32  ;;  %v4085_v19 = vpop.f32.mrb[94].mxu0  ;;  %4134 = vmatmul.mubr.f32.gmra.mrb[106].mxu1 %v2514_v6  ;;  %v2953_v32 = vld [vmem:[%s5917_s13] sm:$0xff] }
 0xa74   : > { %v2491_v2 = vpop.f32.mrb[95].mxu0  ;;  %v2518_v16 = vadd.f32 %v4085_v19, %v6018_v57  ;;  %v2958_v57 = vld [vmem:[%s5917_s13 + $0x28] sm:$0xff] }
 0xa75   : > { %v2516_v12 = vadd.f32 %v2491_v2, %v6016_v5  ;;  %4136 = vmatprep.mubr.f32.mxu1 %v2515_v44  ;;  %v2954_v44 = vld [vmem:[%s5917_s13 + $0x8] sm:$0xff]  ;;  %v4579_v2 = vmov 0.0|0.0   ;;  %v2955_v5 = vld [vmem:[%s5917_s13 + $0x10] sm:$0xff] }
 0xa76   : > { %v4430_v19 = vpack.c.bf16 %v2954_v44, %v2953_v32  ;;  %4429 = vmatprep.subr.bf16.mxu1 %v4579_v2 }
 0xa77   : > { %4137 = vmatmul.mubr.f32.gmra.mrb[108].mxu1 %v2516_v12  ;;  %v2956_v12 = vld [vmem:[%s5917_s13 + $0x18] sm:$0xff] }
 0xa78   : > { %4139 = vmatprep.mubr.f32.mxu1 %v2517_v27  ;;  %4431 = vmatpush3.bf16.msra.mxu1 %v4430_v19  ;;  %v4433_v54 = vpack.c.bf16 %v2956_v12, %v2955_v5  ;;  %v2957_v27 = vld [vmem:[%s5917_s13 + $0x20] sm:$0xff] }
 0xa79   : > { %4432 = vmatprep.subr.bf16.mxu1 %v4579_v2 }
 0xa7b   : > { %4140 = vmatmul.mubr.f32.gmra.mrb[110].mxu1 %v2518_v16  ;;  %v4436_v16 = vpack.c.bf16 %v2958_v57, %v2957_v27 }
 0xa7c   : > { %4434 = vmatpush3.bf16.msra.mxu1 %v4433_v54 }
 0xa7d   : > { %4435 = vmatprep.subr.bf16.mxu1 %v4579_v2 }
 0xa80   : > { %4437 = vmatpush3.bf16.msra.mxu1 %v4436_v16 }
 0xa81   : > { %4438 = vmatprep.subr.bf16.mxu1 %v4579_v2 }
 0xa84   : > { %4440 = vmatpush3.bf16.msra.mxu1 %v4439_v17 }
 0xa85   : > { %4441 = vmatprep.subr.bf16.mxu1 %v4579_v2 }
 0xb32   : > { %v4120_v21 = vpop.f32.mrb[96].mxu1 }
 0xb33   : > { %v2616_v10 = vadd.f32 %v4120_v21, %v3250_v40  ;;  %v2610_v42 = vpop.f32.mrb[97].mxu1  ;;  %v2963_v21 = vld [vmem:[%s5917_s13 + $0x50] sm:$0xff] }
 0xb34   : > { %v2611_v14 = vadd.f32 %v3250_v40, %v2610_v42  ;;  %v2965_v42 = vld [vmem:[%s5917_s13 + $0x60] sm:$0xff] }
 0xb35   : > { %v2690_v0 = vmax.f32 %v2616_v10, 0.0  ;;  %v2964_v10 = vld [vmem:[%s5917_s13 + $0x58] sm:$0xff] }
 0xb36   : > { %v2689_v30 = vmax.f32 %v2611_v14, 0.0  ;;  %v4123_v37 = vpop.f32.mrb[98].mxu1  ;;  %v4445_v14 = vpack.c.bf16 %v2964_v10, %v2963_v21 }
 0xb37   : > { %v2626_v47 = vadd.f32 %v4123_v37, %v3250_v40  ;;  %v2620_v56 = vpop.f32.mrb[99].mxu1 }
 0xb38   : > { %v2621_v52 = vadd.f32 %v3250_v40, %v2620_v56  ;;  %4174 = vmatprep.mubr.f32.mxu0 %v2689_v30  ;;  %v2966_v30 = vld [vmem:[%s5917_s13 + $0x68] sm:$0xff] }
 0xb39   : > { %4175 = vmatmul.mubr.f32.vlgmr.msra.gmra.mrb[96].mxu0 %v2690_v0  ;;  %v2692_v62 = vmax.f32 %v2626_v47, 0.0  ;;  %v4448_v37 = vpack.c.bf16 %v2966_v30, %v2965_v42  ;;  %v2967_v0 = vld [vmem:[%s5917_s13 + $0x70] sm:$0xff]  ;;  %v2968_v47 = vld [vmem:[%s5917_s13 + $0x78] sm:$0xff] }
 0xb3a   : > { %v2691_v50 = vmax.f32 %v2621_v52, 0.0  ;;  %v4126_v45 = vpop.f32.mrb[100].mxu1  ;;  %v4451_v56 = vpack.c.bf16 %v2968_v47, %v2967_v0  ;;  %v4581_v52 = vmov 0.0  }
 0xb3b   : > { %v2636_v26 = vadd.f32 %v4126_v45, %v3250_v40  ;;  %v2630_v53 = vpop.f32.mrb[101].mxu1  ;;  %4230 = vmatprep.mubr.msk.f32.mxu1 %vm4580_vm2, %v4581_v52 }
 0xb3c   : > { %v2631_v49 = vadd.f32 %v3250_v40, %v2630_v53  ;;  %4177 = vmatprep.mubr.f32.mxu0 %v2691_v50  ;;  %v2876_v50 = vlaneseq  ;;  %v5802_v53 = vld [vmem:[%s5916_s12 + $0x2] ss:$0 sm:$0xff] }
 0xb3d   : > { %4178 = vmatmul.mubr.f32.gmra.mrb[98].mxu0 %v2692_v62  ;;  %v2694_v38 = vmax.f32 %v2636_v26, 0.0  ;;  %v5797_v26 = vstv %s5739_s18  ;;  %s4454_s18 = spop %4453 }
 0xb3e   : > { %v2693_v36 = vmax.f32 %v2631_v49, 0.0  ;;  %v4129_v61 = vpop.f32.mrb[102].mxu1  ;;  %v5793_v45 = vshrl.u32 %v2876_v50, 7 }
 0xb3f   : > { %v2646_v25 = vadd.f32 %v4129_v61, %v3250_v40  ;;  %v2640_v60 = vpop.f32.mrb[103].mxu1 }
 0xb40   : > { %v2641_v59 = vadd.f32 %v3250_v40, %v2640_v60  ;;  %4180 = vmatprep.mubr.f32.mxu0 %v2693_v36  ;;  %v2878_v62 = vadd.s32 8, %v5793_v45  ;;  %v2880_v36 = vadd.s32 24, %v5793_v45  ;;  %vm2894_vm4 = vcmp.lt.s32.totalorder %v5793_v45, %v5797_v26 }
 0xb41   : > { %4181 = vmatmul.mubr.f32.gmra.mrb[100].mxu0 %v2694_v38  ;;  %v2696_v51 = vmax.f32 %v2646_v25, 0.0  ;;  %v2879_v25 = vadd.s32 16, %v5793_v45  ;;  %v2888_v12 = vadd.s32 88, %v5793_v45  ;;  %v2887_v16 = vadd.s32 80, %v5793_v45 }
 0xb42   : > { %v2695_v34 = vmax.f32 %v2641_v59, 0.0  ;;  %v4132_v46 = vpop.f32.mrb[104].mxu1  ;;  %vm2895_vm3 = vcmp.lt.s32.totalorder %v2878_v62, %v5797_v26  ;;  %vm2897_vm5 = vcmp.lt.s32.totalorder %v2880_v36, %v5797_v26  ;;  %v2892_v52 = vadd.s32 120, %v5793_v45 }
 0xb43   : > { %v2656_v35 = vadd.f32 %v4132_v46, %v3250_v40  ;;  %v2650_v33 = vpop.f32.mrb[105].mxu1  ;;  %vm2896_vm6 = vcmp.lt.s32.totalorder %v2879_v25, %v5797_v26  ;;  %vm2905_vm13 = vcmp.lt.s32.totalorder %v2888_v12, %v5797_v26  ;;  %vm2904_vm14 = vcmp.lt.s32.totalorder %v2887_v16, %v5797_v26 }
 0xb44   : > { %v2651_v7 = vadd.f32 %v3250_v40, %v2650_v33  ;;  %4183 = vmatprep.mubr.f32.mxu0 %v2695_v34  ;;  %v2891_v36 = vadd.s32 112, %v5793_v45  ;;  %vm2909_vm1 = vcmp.lt.s32.totalorder %v2892_v52, %v5797_v26 }
 0xb45   : > { %4184 = vmatmul.mubr.f32.gmra.mrb[102].mxu0 %v2696_v51  ;;  %v2698_v39 = vmax.f32 %v2656_v35, 0.0  ;;  %v2882_v51 = vadd.s32 40, %v5793_v45 }
 0xb46   : > { %v2697_v4 = vmax.f32 %v2651_v7, 0.0  ;;  %v4135_v20 = vpop.f32.mrb[106].mxu1  ;;  %vm2908_vm2 = vcmp.lt.s32.totalorder %v2891_v36, %v5797_v26 }
 0xb47   : > { %v2666_v29 = vadd.f32 %v4135_v20, %v3250_v40  ;;  %v2660_v9 = vpop.f32.mrb[107].mxu1  ;;  %vm2899_vm7 = vcmp.lt.s32.totalorder %v2882_v51, %v5797_v26 }
 0xb48   : > { %v2661_v31 = vadd.f32 %v3250_v40, %v2660_v9  ;;  %4186 = vmatprep.mubr.f32.mxu0 %v2697_v4  ;;  %v2881_v4 = vadd.s32 32, %v5793_v45 }
 0xb49   : > { %4187 = vmatmul.mubr.f32.gmra.mrb[104].mxu0 %v2698_v39  ;;  %v2700_v28 = vmax.f32 %v2666_v29, 0.0 }
 0xb4a   : > { %v2699_v18 = vmax.f32 %v2661_v31, 0.0  ;;  %v4138_v15 = vpop.f32.mrb[108].mxu1  ;;  %v2884_v31 = vadd.s32 56, %v5793_v45  ;;  %vm2898_vm8 = vcmp.lt.s32.totalorder %v2881_v4, %v5797_v26 }
 0xb4b   : > { %v2676_v41 = vadd.f32 %v4138_v15, %v3250_v40  ;;  %v2670_v13 = vpop.f32.mrb[109].mxu1 }
 0xb4c   : > { %v2671_v63 = vadd.f32 %v3250_v40, %v2670_v13  ;;  %4189 = vmatprep.mubr.f32.mxu0 %v2699_v18  ;;  %vm2901_vm9 = vcmp.lt.s32.totalorder %v2884_v31, %v5797_v26 }
 0xb4d   : > { %4190 = vmatmul.mubr.f32.gmra.mrb[106].mxu0 %v2700_v28  ;;  %v2702_v24 = vmax.f32 %v2676_v41, 0.0  ;;  %v2883_v41 = vadd.s32 48, %v5793_v45 }
 0xb4e   : > { %v2701_v8 = vmax.f32 %v2671_v63, 0.0  ;;  %v4141_v22 = vpop.f32.mrb[110].mxu1 }
 0xb4f   : > { %v2686_v55 = vadd.f32 %v4141_v22, %v3250_v40  ;;  %v2680_v48 = vpop.f32.mrb[111].mxu1  ;;  %vm2900_vm10 = vcmp.lt.s32.totalorder %v2883_v41, %v5797_v26 }
 0xb50   : > { %v2681_v6 = vadd.f32 %v3250_v40, %v2680_v48  ;;  %4192 = vmatprep.mubr.f32.mxu0 %v2701_v8  ;;  %v4442_v40 = vpack.c.bf16 %v2962_v11, %v2961_v1 }
 0xb51   : > { %4193 = vmatmul.mubr.f32.gmra.mrb[108].mxu0 %v2702_v24  ;;  %v2704_v23 = vmax.f32 %v2686_v55, 0.0  ;;  %v2886_v55 = vadd.s32 72, %v5793_v45 }
 0xb52   : > { %v2703_v58 = vmax.f32 %v2681_v6, 0.0  ;;  %4443 = vmatpush3.bf16.msra.mxu1 %v4442_v40  ;;  %v2890_v40 = vadd.s32 104, %v5793_v45 }
 0xb53   : > { %4444 = vmatprep.subr.bf16.mxu1 %v4579_v2  ;;  %vm2903_vm11 = vcmp.lt.s32.totalorder %v2886_v55, %v5797_v26 }
 0xb54   : > { %4195 = vmatprep.mubr.f32.mxu0 %v2703_v58  ;;  %vm2907_vm15 = vcmp.lt.s32.totalorder %v2890_v40, %v5797_v26 }
 0xb55   : > { %4196 = vmatmul.mubr.f32.gmra.mrb[110].mxu0 %v2704_v23  ;;  %v2885_v23 = vadd.s32 64, %v5793_v45 }
 0xb56   : > { %4446 = vmatpush3.bf16.msra.mxu1 %v4445_v14  ;;  %v2889_v14 = vadd.s32 96, %v5793_v45 }
 0xb57   : > { %4447 = vmatprep.subr.bf16.mxu1 %v4579_v2  ;;  %vm2902_vm12 = vcmp.lt.s32.totalorder %v2885_v23, %v5797_v26 }
 0xb58   : > { %vm2906_vm0 = vcmp.lt.s32.totalorder %v2889_v14, %v5797_v26  ;;  %v2969_v26 = vld [vmem:[%s5918_s14] sm:$0x1] }
 0xb5a   : > { %4449 = vmatpush3.bf16.msra.mxu1 %v4448_v37 }
 0xb5b   : > { %4450 = vmatprep.subr.bf16.mxu1 %v4579_v2 }
 0xb5e   : > { %4452 = vmatpush3.bf16.msra.mxu1 %v4451_v56 }
 0xc0c   : > { %v4176_v49 = vpop.f32.mrb[96].mxu0 }
 0xc0d   : > { %v2802_v61 = vadd.f32 %v4176_v49, %v5802_v53  ;;  %v2796_v38 = vpop.f32.mrb[97].mxu0 }
 0xc0e   : > { %v2797_v60 = vadd.f32 %v5802_v53, %v2796_v38 }
 0xc0f   : > { %v2911_v59 = vsel %vm2895_vm3, %v2802_v61, 0.0 }
 0xc10   : > { %v2910_v34 = vsel %vm2894_vm4, %v2797_v60, 0.0  ;;  %v4179_v46 = vpop.f32.mrb[98].mxu0 }
 0xc11   : > { %v2926_v35 = vadd.f32 %v2911_v59, %v2910_v34  ;;  %v2812_v33 = vadd.f32 %v4179_v46, %v5802_v53  ;;  %v2806_v7 = vpop.f32.mrb[99].mxu0 }
 0xc12   : > { %v2807_v20 = vadd.f32 %v5802_v53, %v2806_v7 }
 0xc13   : > { %v2913_v39 = vsel %vm2897_vm5, %v2812_v33, 0.0 }
 0xc14   : > { %v2912_v29 = vsel %vm2896_vm6, %v2807_v20, 0.0  ;;  %v4182_v9 = vpop.f32.mrb[100].mxu0 }
 0xc15   : > { %v2927_v18 = vadd.f32 %v2926_v35, %v2912_v29  ;;  %v2822_v15 = vadd.f32 %v4182_v9, %v5802_v53  ;;  %v2816_v28 = vpop.f32.mrb[101].mxu0 }
 0xc16   : > { %v2817_v13 = vadd.f32 %v5802_v53, %v2816_v28 }
 0xc17   : > { %v2915_v63 = vsel %vm2899_vm7, %v2822_v15, 0.0  ;;  %v2928_v8 = vadd.f32 %v2927_v18, %v2913_v39  ;;  %v2951_v15 = vstv %s4454_s18  ;;  %s5862_s18 = scalar_lea.hbm %s5920_s16, %s3269_s3 }
 0xc18   : > { %v2914_v22 = vsel %vm2898_vm8, %v2817_v13, 0.0  ;;  %v4185_v24 = vpop.f32.mrb[102].mxu0  ;;  %v3041_v13 = vld [vmem:[%s5919_s15] sm:$0x1] }
 0xc19   : > { %v2929_v48 = vadd.f32 %v2928_v8, %v2914_v22  ;;  %v2832_v6 = vadd.f32 %v4185_v24, %v5802_v53  ;;  %v2826_v58 = vpop.f32.mrb[103].mxu0 }
 0xc1a   : > { %v2827_v32 = vadd.f32 %v5802_v53, %v2826_v58 }
 0xc1b   : > { %v2917_v44 = vsel %vm2901_vm9, %v2832_v6, 0.0  ;;  %v2930_v19 = vadd.f32 %v2929_v48, %v2915_v63 }
 0xc1c   : > { %v2916_v2 = vsel %vm2900_vm10, %v2827_v32, 0.0  ;;  %v4188_v5 = vpop.f32.mrb[104].mxu0 }
 0xc1d   : > { %v2931_v54 = vadd.f32 %v2930_v19, %v2916_v2  ;;  %v2842_v27 = vadd.f32 %v4188_v5, %v5802_v53  ;;  %v2836_v57 = vpop.f32.mrb[105].mxu0 }
 0xc1e   : > { %v2837_v3 = vadd.f32 %v5802_v53, %v2836_v57 }
 0xc1f   : > { %v2919_v43 = vsel %vm2903_vm11, %v2842_v27, 0.0  ;;  %v2932_v17 = vadd.f32 %v2931_v54, %v2917_v44 }
 0xc20   : > { %v2918_v1 = vsel %vm2902_vm12, %v2837_v3, 0.0  ;;  %v4191_v11 = vpop.f32.mrb[106].mxu0 }
 0xc21   : > { %v2933_v21 = vadd.f32 %v2932_v17, %v2918_v1  ;;  %v2852_v10 = vadd.f32 %v4191_v11, %v5802_v53  ;;  %v2846_v42 = vpop.f32.mrb[107].mxu0 }
 0xc22   : > { %v2847_v30 = vadd.f32 %v5802_v53, %v2846_v42 }
 0xc23   : > { %v2921_v37 = vsel %vm2905_vm13, %v2852_v10, 0.0  ;;  %v2934_v0 = vadd.f32 %v2933_v21, %v2919_v43 }
 0xc24   : > { %v2920_v47 = vsel %vm2904_vm14, %v2847_v30, 0.0  ;;  %v4194_v56 = vpop.f32.mrb[108].mxu0 }
 0xc25   : > { %v2935_v50 = vadd.f32 %v2934_v0, %v2920_v47  ;;  %v2862_v62 = vadd.f32 %v4194_v56, %v5802_v53  ;;  %v2856_v49 = vpop.f32.mrb[109].mxu0 }
 0xc26   : > { %v2857_v61 = vadd.f32 %v5802_v53, %v2856_v49 }
 0xc27   : > { %v2923_v38 = vsel %vm2907_vm15, %v2862_v62, 0.0  ;;  %v2936_v25 = vadd.f32 %v2935_v50, %v2921_v37 }
 0xc28   : > { %v2922_v60 = vsel %vm2906_vm0, %v2857_v61, 0.0  ;;  %v4197_v59 = vpop.f32.mrb[110].mxu0 }
 0xc29   : > { %v2937_v34 = vadd.f32 %v2936_v25, %v2922_v60  ;;  %v2872_v46 = vadd.f32 %v4197_v59, %v5802_v53  ;;  %v2866_v51 = vpop.f32.mrb[111].mxu0 }
 0xc2a   : > { %v2867_v35 = vadd.f32 %v5802_v53, %v2866_v51 }
 0xc2b   : > { %v2925_v33 = vsel %vm2909_vm1, %v2872_v46, 0.0  ;;  %v2938_v7 = vadd.f32 %v2937_v34, %v2923_v38 }
 0xc2c   : > { %v2924_v45 = vsel %vm2908_vm2, %v2867_v35, 0.0 }
 0xc2d   : > { %v2939_v4 = vadd.f32 %v2938_v7, %v2924_v45 }
 0xc2f   : > { %v2940_v20 = vadd.f32 %v2939_v4, %v2925_v33 }
 0xc31   : > { %v2941_v39 = vrot.slane %v2940_v20, 4 }
 0xc33   : > { %v2942_v29 = vadd.f32 %v2941_v39, %v2940_v20 }
 0xc35   : > { %v2943_v9 = vrot.slane %v2942_v29, 2 }
 0xc37   : > { %v2944_v31 = vadd.f32 %v2943_v9, %v2942_v29 }
 0xc39   : > { %v2945_v18 = vrot.slane %v2944_v31, 1 }
 0xc3b   : > { %v2946_v28 = vadd.f32 %v2945_v18, %v2944_v31 }
 0xc3d   : > { %v2952_v41 = vmul.f32 %v2951_v15, %v2946_v28 }
 0xc3f   : > { %4231 = vmatmul.mubr.f32.vlgmr.msra.gmra.mrb[112].mxu1 %v2952_v41 }
 0xd12   : > { %v3036_v53 = vpop.f32.mrb[112].mxu1 }
 0xd13   : > { %v3037_v63 = vadd.f32 %v3036_v53, %v2969_v26  ;;  %v4232_v8 = vpop.f32.mrb[113].mxu1 }
 0xd15   : > { %vm3040_vm3 = vcmp.gt.f32.partialorder %v3037_v63, 0.0  ;;  %v3042_v22 = vmul.f32 %v3041_v13, %v3037_v63 }
 0xd17   : > { %v3043_v24 = vsel %vm3040_vm3, %v3037_v63, %v3042_v22 }
 0xd18   : > { %3044 = vst [vmem:[%s538_s17] sm:$0x1] %v3043_v24 }
 0xd19   : > { %4525 = shalt.err (!%p4522_p8)
}
 0xd1a   : > { %s4526_s25 = scalar_lea.hbm %s5862_s18, 16  ;;  %s4530_s5 = scalar_lea.hbm %s5920_s16, 96 }
 0xd1b   : > { %p4527_p9 = scmp.ne.s32.totalorder %s5862_s18, %s4526_s25  ;;  %p4531_p0 = scmp.lt.u32.totalorder %s5862_s18, %s5920_s16 }
 0xd1c   : > { %p4532_p1 = scmp.lt.u32.totalorder %s4530_s5, %s4526_s25  ;;  %p4534_p3 = scmp.lt.u32.totalorder %s4526_s25, %s5862_s18 }
 0xd1d   : > { %p4528_p12 = pnand %p4527_p9, %p4709_p10 }
 0xd1e   : > { %p4533_p2 = por %p4532_p1, %p4531_p0 }
 0xd1f   : > { %p4529_p13 = pneg %p4528_p12 }
 0xd20   : > { %p4535_p4 = por %p4534_p3, %p4533_p2 }
 0xd22   : > { %p4536_p5 = pnand %p4535_p4, %p4529_p13 }
 0xd24   : > { %4539 = shalt.err (!%p4536_p5)
}
 0xd25   : > { %4455 = dma.vmem_to_hbm [thread:$0]  (%p4709_p10), %s5864_s23, 16, %s5862_s18, %s3046_s22  }
 0xd26 PF: > { %p4461_p6 = scmp.ge.s32.totalorder %s4576_s29, 2  ;;  %s3070_s1 = sand.u32 1, %s4564_s26  }
 0xd27   : > { %s3071_s2 = scalar_lea.sflag [#allocation5], %s3070_s1 }
 0xd28   : > { %p4458_p7 = pnand %p4461_p6, %p4713_p11 }
 0xd2a   : > { %4559 = dma.done.wait (!%p4458_p7), %s3071_s2, 16  }
 0xd2b   : > { %4561 = vsyncadd (!%p4458_p7), %s3071_s2, 4294967280  ;;  %p32_p8 = scmp.ge.s32.totalorder %s4696_s0, 8   ;;  %s6019_s26 = smov %s4568_s27 }
 0xd2c   : > { %s6020_s27 = smov %s4572_s28  ;;  %s6021_s28 = smov %s4707_s19 }
 0xd2d   : > { %s6022_s29 = smov %s4696_s0  ;;  %34 = sbr.rel (!%p32_p8) target bundleno = 25 (0x19), region = 132 }
 0xd34   :  { %3075 = vsyncpa [#allocation5], 1 }
 0xd35   :  { %3077 = vsyncpa [#allocation5 + $0x1], 1 }

</bundles_post_ra>
